<compile_context>
chip_gen: v7x
topology: tpu7x:2x2x1
jax: 0.10.0
libtpu: 0.0.40
codegen_flags: <defaults>
</compile_context>

<pallas_src>
import functools

import jax
import jax.numpy as jnp
from jax.experimental import pallas as pl
from jax.experimental.pallas import tpu as pltpu

IGNORE_INDEX = 0
NUM_CLASSES = 10
# tail classes = [2, 3, 4, 6, 7]  (tail_one_hot = [0,0,1,1,1,0,1,1,0,0])
TAIL_CLASSES = (2, 3, 4, 6, 7)
TAIL_ONE_HOT = jnp.array([0, 0, 1, 1, 1, 0, 1, 1, 0, 0], dtype=jnp.float32)


def _round_up(x, m):
    return ((x + m - 1) // m) * m


def _celoss_2experts_kernel(x0_ref, x1_ref, tgt_ref, head_ref, tail_ref, acc_ref,
                            *, num_classes, r_chunk, use_l2, inv_pc):
    n = pl.program_id(0)
    t = pl.program_id(1)

    # --- zero the global accumulators on the very first grid step
    @pl.when(jnp.logical_and(n == 0, t == 0))
    def _init():
        for i in range(5):
            acc_ref[i] = jnp.float32(0.0)

    r_blk = x0_ref.shape[2]              # static
    n_chunks = r_blk // r_chunk          # static

    def expert_stats(ref, start, tgt, want_sq):
        # pass 1: per-pixel max over the (unrolled) class dim -> (r_chunk, 128)
        m = ref[0, 0, pl.ds(start, r_chunk), :].astype(jnp.float32)
        for c in range(1, num_classes):
            m = jnp.maximum(m, ref[0, c, pl.ds(start, r_chunk), :].astype(jnp.float32))
        # pass 2: sum(exp), target-logit gather, optional sum of squares
        s = jnp.zeros_like(m)
        xt = jnp.zeros_like(m)
        sq = jnp.zeros_like(m) if want_sq else None
        for c in range(num_classes):
            r = ref[0, c, pl.ds(start, r_chunk), :].astype(jnp.float32)
            s = s + jnp.exp(r - m)
            xt = jnp.where(tgt == c, r, xt)
            if want_sq:
                sq = sq + r * r
        logp_t = xt - (m + jnp.log(s))   # log-softmax at the target class
        return logp_t, sq

    def chunk_body(j, carry):
        a0, a1, a2, a3, a4 = carry
        start = pl.multiple_of(j * r_chunk, r_chunk)
        tgt = tgt_ref[0, 0, pl.ds(start, r_chunk), :]        # (r_chunk, 128) int32

        valid = (tgt != IGNORE_INDEX).astype(jnp.float32)
        is_tail = (tgt == TAIL_CLASSES[0])
        for cls in TAIL_CLASSES[1:]:
            is_tail = jnp.logical_or(is_tail, tgt == cls)
        w = is_tail.astype(jnp.float32)                      # tail_one_hot[target]

        # head expert: plain CE with ignore_index
        logp0, _ = expert_stats(x0_ref, start, tgt, want_sq=False)
        a0 = a0 + jnp.sum(valid * logp0)
        a1 = a1 + jnp.sum(valid)

        # tail expert: weighted CE (+ optional complementary L2 on non-tail pixels)
        logp1, sq1 = expert_stats(x1_ref, start, tgt, want_sq=use_l2)
        a2 = a2 + jnp.sum(w * logp1)
        a3 = a3 + jnp.sum(w)
        if use_l2:
            a4 = a4 + jnp.sum((1.0 - w) * sq1)
        return a0, a1, a2, a3, a4

    zero = jnp.zeros((), jnp.float32)
    sums = jax.lax.fori_loop(0, n_chunks, chunk_body, (zero, zero, zero, zero, zero))

    acc_ref[0] += sums[0]
    acc_ref[1] += sums[1]
    acc_ref[2] += sums[2]
    acc_ref[3] += sums[3]
    acc_ref[4] += sums[4]

    # --- finalize on the last grid step only (single output store)
    @pl.when(jnp.logical_and(n == pl.num_programs(0) - 1,
                             t == pl.num_programs(1) - 1))
    def _finalize():
        sum_vlp0 = acc_ref[0]
        n_valid = acc_ref[1]
        sum_wlp1 = acc_ref[2]
        sum_w = acc_ref[3]
        # NOTE: matches PyTorch — NaN if every target equals ignore_index.
        head = -sum_vlp0 / n_valid
        tail = -sum_wlp1 / jnp.maximum(sum_w, 1.0)
        if use_l2:
            tail = tail + acc_ref[4] * inv_pc
        # PyTorch only adds the tail terms when is_tail_pixel.any()
        tail = jnp.where(sum_w > 0.0, tail, jnp.float32(0.0))
        head_ref[...] = jnp.reshape(head, (1, 1))
        tail_ref[...] = jnp.reshape(tail, (1, 1))


def celoss_2experts(exp_0, exp_1, targets, use_l2_penalty=True, block_rows=256):
    """exp_0, exp_1: [N, C, H, W] float logits. targets: [N, H, W] int labels.

    Returns (head_loss scalar, tail_loss shape-(1,) array), matching the PyTorch module.
    """
    N, C, H, W = exp_0.shape
    assert exp_1.shape == exp_0.shape
    assert C == NUM_CLASSES, "tail_one_hot is defined for 10 classes"
    HW = H * W
    P = N * HW

    # ---- class-major layout, no transpose: NCHW -> (N, C, HW) -> (N, C, r_pad, 128)
    r_total = pl.cdiv(HW, 128)
    r_pad = _round_up(r_total, 8)
    if r_pad <= block_rows:
        r_blk = r_pad
    else:
        r_blk = None
        for k in range(block_rows, 31, -8):   # largest divisor avoids a padding pass
            if r_pad % k == 0:
                r_blk = k
                break
        if r_blk is None:
            r_pad = _round_up(r_pad, block_rows)
            r_blk = block_rows
    r_chunk = 16 if (r_blk % 16 == 0) else 8
    hw_pad = r_pad * 128
    pad = hw_pad - HW

    def prep_logits(x):
        x = x.reshape(N, C, HW)
        if pad:
            x = jnp.pad(x, ((0, 0), (0, 0), (0, pad)))     # zero logits in padding
        return x.reshape(N, C, r_pad, 128)

    x0 = prep_logits(exp_0)
    x1 = prep_logits(exp_1)
    tgt = targets.reshape(N, 1, HW).astype(jnp.int32)
    if pad:
        tgt = jnp.pad(tgt, ((0, 0), (0, 0), (0, pad)))      # pad value 0 == ignore_index
    tgt = tgt.reshape(N, 1, r_pad, 128)

    n_tiles = r_pad // r_blk
    grid = (N, n_tiles)

    kern = functools.partial(
        _celoss_2experts_kernel,
        num_classes=C, r_chunk=r_chunk, use_l2=use_l2_penalty,
        inv_pc=1.0 / float(P * C))

    cost = pl.CostEstimate(
        flops=int(P * C * 12),
        transcendentals=int(2 * P * (C + 1)),
        bytes_accessed=int(P * (2 * C * 4 + 4) + 8))

    head, tail = pl.pallas_call(
        kern,
        out_shape=(jax.ShapeDtypeStruct((1, 1), jnp.float32),
                   jax.ShapeDtypeStruct((1, 1), jnp.float32)),
        grid=grid,
        in_specs=[
            pl.BlockSpec((1, C, r_blk, 128), lambda n, t: (n, 0, t, 0)),
            pl.BlockSpec((1, C, r_blk, 128), lambda n, t: (n, 0, t, 0)),
            pl.BlockSpec((1, 1, r_blk, 128), lambda n, t: (n, 0, t, 0)),
        ],
        out_specs=(
            pl.BlockSpec((1, 1), lambda n, t: (0, 0)),
            pl.BlockSpec((1, 1), lambda n, t: (0, 0)),
        ),
        scratch_shapes=[pltpu.SMEM((8,), jnp.float32)],
        compiler_params=pltpu.CompilerParams(
            dimension_semantics=("arbitrary", "arbitrary")),
        cost_estimate=cost,
    )(x0, x1, tgt)
    return head[0, 0], tail.reshape(1)


def _reference(exp_0, exp_1, targets, use_l2_penalty=True):
    """Pure-JAX reference mirroring the PyTorch forward, for verification."""
    N, C, H, W = exp_0.shape
    x0 = jnp.transpose(exp_0, (0, 2, 3, 1)).reshape(-1, C).astype(jnp.float32)
    x1 = jnp.transpose(exp_1, (0, 2, 3, 1)).reshape(-1, C).astype(jnp.float32)
    t = targets.reshape(-1).astype(jnp.int32)
    lp0 = jnp.take_along_axis(jax.nn.log_softmax(x0, -1), t[:, None], -1)[:, 0]
    lp1 = jnp.take_along_axis(jax.nn.log_softmax(x1, -1), t[:, None], -1)[:, 0]
    valid = (t != IGNORE_INDEX).astype(jnp.float32)
    head = -jnp.sum(valid * lp0) / jnp.sum(valid)
    w = TAIL_ONE_HOT[t]
    sum_w = jnp.sum(w)
    tail_ce = -jnp.sum(w * lp1) / jnp.maximum(sum_w, 1.0)
    tail = tail_ce
    if use_l2_penalty:
        tail = tail + jnp.sum((1.0 - w)[:, None] * x1 * x1) / float(x1.size)
    return head, jnp.where(sum_w > 0.0, tail, 0.0)


if __name__ == "__main__":
    key = jax.random.PRNGKey(0)
    k0, k1, kt = jax.random.split(key, 3)

    N, C, H, W = 2, NUM_CLASSES, 16, 16
    exp_0 = jax.random.normal(k0, (N, C, H, W), dtype=jnp.float32)
    exp_1 = jax.random.normal(k1, (N, C, H, W), dtype=jnp.float32)
    targets = jax.random.randint(kt, (N, H, W), 0, C, dtype=jnp.int32)

    for use_l2 in (True, False):
        head_loss, tail_loss = celoss_2experts(exp_0, exp_1, targets, use_l2_penalty=use_l2)
        jax.block_until_ready((head_loss, tail_loss))
        ref_head, ref_tail = _reference(exp_0, exp_1, targets, use_l2_penalty=use_l2)
        assert jnp.allclose(head_loss, ref_head, rtol=1e-4, atol=1e-4), (use_l2, head_loss, ref_head)
        assert jnp.allclose(tail_loss[0], ref_tail, rtol=1e-4, atol=1e-4), (use_l2, tail_loss, ref_tail)

    print("KERNEL_OK")
</pallas_src>

<mosaic_0001>
module attributes {stable_mosaic.version = 11 : i64} {
  func.func @_celoss_2experts_kernel(%arg0: i32, %arg1: i32, %arg2: memref<1x10x8x128xf32, #tpu.memory_space<vmem>>, %arg3: memref<1x10x8x128xf32, #tpu.memory_space<vmem>>, %arg4: memref<1x1x8x128xi32, #tpu.memory_space<vmem>>, %arg5: memref<1x1xf32, #tpu.memory_space<vmem>>, %arg6: memref<1x1xf32, #tpu.memory_space<vmem>>, %arg7: memref<8xf32, #tpu.memory_space<smem>>) attributes {dimension_semantics = [#tpu.dimension_semantics<arbitrary>, #tpu.dimension_semantics<arbitrary>], iteration_bounds = array<i64: 2, 1>, scalar_prefetch = 0 : i64, scratch_operands = 1 : i64, tpu.core_type = #tpu.core_type<tc>, window_params = [{transform_indices = @transform_0, window_bounds = array<i64: 1, 10, 8, 128>}, {transform_indices = @transform_1, window_bounds = array<i64: 1, 10, 8, 128>}, {transform_indices = @transform_2, window_bounds = array<i64: 1, 1, 8, 128>}, {pipeline_mode = #tpu.pipeline_mode<synchronous>, transform_indices = @transform_3, window_bounds = array<i64: 1, 1>}, {pipeline_mode = #tpu.pipeline_mode<synchronous>, transform_indices = @transform_4, window_bounds = array<i64: 1, 1>}]} {
    %c0_i32 = arith.constant 0 : i32
    %0 = arith.cmpi eq, %arg0, %c0_i32 : i32
    %c0_i32_0 = arith.constant 0 : i32
    %1 = arith.cmpi eq, %arg1, %c0_i32_0 : i32
    %2 = arith.andi %0, %1 : i1
    %3 = arith.extui %2 : i1 to i32
    %c0_i32_1 = arith.constant 0 : i32
    %4 = arith.cmpi ne, %3, %c0_i32_1 : i32
    scf.if %4 {
      %cst_163 = arith.constant 0.000000e+00 : f32
      %c0_164 = arith.constant 0 : index
      %369 = memref.load %arg7[%c0_164] : memref<8xf32, #tpu.memory_space<smem>>
      memref.store %cst_163, %arg7[%c0_164] : memref<8xf32, #tpu.memory_space<smem>>
      %cst_165 = arith.constant 0.000000e+00 : f32
      %c1_166 = arith.constant 1 : index
      %370 = memref.load %arg7[%c1_166] : memref<8xf32, #tpu.memory_space<smem>>
      memref.store %cst_165, %arg7[%c1_166] : memref<8xf32, #tpu.memory_space<smem>>
      %cst_167 = arith.constant 0.000000e+00 : f32
      %c2_168 = arith.constant 2 : index
      %371 = memref.load %arg7[%c2_168] : memref<8xf32, #tpu.memory_space<smem>>
      memref.store %cst_167, %arg7[%c2_168] : memref<8xf32, #tpu.memory_space<smem>>
      %cst_169 = arith.constant 0.000000e+00 : f32
      %c3_170 = arith.constant 3 : index
      %372 = memref.load %arg7[%c3_170] : memref<8xf32, #tpu.memory_space<smem>>
      memref.store %cst_169, %arg7[%c3_170] : memref<8xf32, #tpu.memory_space<smem>>
      %cst_171 = arith.constant 0.000000e+00 : f32
      %c4_172 = arith.constant 4 : index
      %373 = memref.load %arg7[%c4_172] : memref<8xf32, #tpu.memory_space<smem>>
      memref.store %cst_171, %arg7[%c4_172] : memref<8xf32, #tpu.memory_space<smem>>
    } else {
    }
    %cst = arith.constant 0.000000e+00 : f32
    %cst_2 = arith.constant 0.000000e+00 : f32
    %cst_3 = arith.constant 0.000000e+00 : f32
    %cst_4 = arith.constant 0.000000e+00 : f32
    %cst_5 = arith.constant 0.000000e+00 : f32
    %c0_i32_6 = arith.constant 0 : i32
    %c8_i32 = arith.constant 8 : i32
    %5 = arith.muli %c0_i32_6, %c8_i32 : i32
    %6 = tpu.assume_multiple %5, 8 : i32
    %c0 = arith.constant 0 : index
    %c0_7 = arith.constant 0 : index
    %7 = arith.index_cast %6 : i32 to index
    %c0_8 = arith.constant 0 : index
    %8 = vector.load %arg4[%c0, %c0_7, %7, %c0_8] : memref<1x1x8x128xi32, #tpu.memory_space<vmem>>, vector<1x1x8x128xi32>
    %9 = vector.shape_cast %8 : vector<1x1x8x128xi32> to vector<8x128xi32>
    %c0_i32_9 = arith.constant 0 : i32
    %10 = vector.broadcast %c0_i32_9 : i32 to vector<8x128xi32>
    %11 = arith.cmpi ne, %9, %10 : vector<8x128xi32>
    %12 = arith.extui %11 : vector<8x128xi1> to vector<8x128xi32>
    %13 = arith.sitofp %12 : vector<8x128xi32> to vector<8x128xf32>
    %c2_i32 = arith.constant 2 : i32
    %14 = vector.broadcast %c2_i32 : i32 to vector<8x128xi32>
    %15 = arith.cmpi eq, %9, %14 : vector<8x128xi32>
    %c3_i32 = arith.constant 3 : i32
    %16 = vector.broadcast %c3_i32 : i32 to vector<8x128xi32>
    %17 = arith.cmpi eq, %9, %16 : vector<8x128xi32>
    %18 = arith.ori %15, %17 : vector<8x128xi1>
    %c4_i32 = arith.constant 4 : i32
    %19 = vector.broadcast %c4_i32 : i32 to vector<8x128xi32>
    %20 = arith.cmpi eq, %9, %19 : vector<8x128xi32>
    %21 = arith.ori %18, %20 : vector<8x128xi1>
    %c6_i32 = arith.constant 6 : i32
    %22 = vector.broadcast %c6_i32 : i32 to vector<8x128xi32>
    %23 = arith.cmpi eq, %9, %22 : vector<8x128xi32>
    %24 = arith.ori %21, %23 : vector<8x128xi1>
    %c7_i32 = arith.constant 7 : i32
    %25 = vector.broadcast %c7_i32 : i32 to vector<8x128xi32>
    %26 = arith.cmpi eq, %9, %25 : vector<8x128xi32>
    %27 = arith.ori %24, %26 : vector<8x128xi1>
    %28 = arith.extui %27 : vector<8x128xi1> to vector<8x128xi32>
    %29 = arith.sitofp %28 : vector<8x128xi32> to vector<8x128xf32>
    %c0_10 = arith.constant 0 : index
    %c0_11 = arith.constant 0 : index
    %30 = arith.index_cast %6 : i32 to index
    %c0_12 = arith.constant 0 : index
    %31 = vector.load %arg2[%c0_10, %c0_11, %30, %c0_12] : memref<1x10x8x128xf32, #tpu.memory_space<vmem>>, vector<1x1x8x128xf32>
    %32 = vector.shape_cast %31 : vector<1x1x8x128xf32> to vector<8x128xf32>
    %c0_13 = arith.constant 0 : index
    %c1 = arith.constant 1 : index
    %33 = arith.index_cast %6 : i32 to index
    %c0_14 = arith.constant 0 : index
    %34 = vector.load %arg2[%c0_13, %c1, %33, %c0_14] : memref<1x10x8x128xf32, #tpu.memory_space<vmem>>, vector<1x1x8x128xf32>
    %35 = vector.shape_cast %34 : vector<1x1x8x128xf32> to vector<8x128xf32>
    %36 = arith.maximumf %32, %35 : vector<8x128xf32>
    %c0_15 = arith.constant 0 : index
    %c2 = arith.constant 2 : index
    %37 = arith.index_cast %6 : i32 to index
    %c0_16 = arith.constant 0 : index
    %38 = vector.load %arg2[%c0_15, %c2, %37, %c0_16] : memref<1x10x8x128xf32, #tpu.memory_space<vmem>>, vector<1x1x8x128xf32>
    %39 = vector.shape_cast %38 : vector<1x1x8x128xf32> to vector<8x128xf32>
    %40 = arith.maximumf %36, %39 : vector<8x128xf32>
    %c0_17 = arith.constant 0 : index
    %c3 = arith.constant 3 : index
    %41 = arith.index_cast %6 : i32 to index
    %c0_18 = arith.constant 0 : index
    %42 = vector.load %arg2[%c0_17, %c3, %41, %c0_18] : memref<1x10x8x128xf32, #tpu.memory_space<vmem>>, vector<1x1x8x128xf32>
    %43 = vector.shape_cast %42 : vector<1x1x8x128xf32> to vector<8x128xf32>
    %44 = arith.maximumf %40, %43 : vector<8x128xf32>
    %c0_19 = arith.constant 0 : index
    %c4 = arith.constant 4 : index
    %45 = arith.index_cast %6 : i32 to index
    %c0_20 = arith.constant 0 : index
    %46 = vector.load %arg2[%c0_19, %c4, %45, %c0_20] : memref<1x10x8x128xf32, #tpu.memory_space<vmem>>, vector<1x1x8x128xf32>
    %47 = vector.shape_cast %46 : vector<1x1x8x128xf32> to vector<8x128xf32>
    %48 = arith.maximumf %44, %47 : vector<8x128xf32>
    %c0_21 = arith.constant 0 : index
    %c5 = arith.constant 5 : index
    %49 = arith.index_cast %6 : i32 to index
    %c0_22 = arith.constant 0 : index
    %50 = vector.load %arg2[%c0_21, %c5, %49, %c0_22] : memref<1x10x8x128xf32, #tpu.memory_space<vmem>>, vector<1x1x8x128xf32>
    %51 = vector.shape_cast %50 : vector<1x1x8x128xf32> to vector<8x128xf32>
    %52 = arith.maximumf %48, %51 : vector<8x128xf32>
    %c0_23 = arith.constant 0 : index
    %c6 = arith.constant 6 : index
    %53 = arith.index_cast %6 : i32 to index
    %c0_24 = arith.constant 0 : index
    %54 = vector.load %arg2[%c0_23, %c6, %53, %c0_24] : memref<1x10x8x128xf32, #tpu.memory_space<vmem>>, vector<1x1x8x128xf32>
    %55 = vector.shape_cast %54 : vector<1x1x8x128xf32> to vector<8x128xf32>
    %56 = arith.maximumf %52, %55 : vector<8x128xf32>
    %c0_25 = arith.constant 0 : index
    %c7 = arith.constant 7 : index
    %57 = arith.index_cast %6 : i32 to index
    %c0_26 = arith.constant 0 : index
    %58 = vector.load %arg2[%c0_25, %c7, %57, %c0_26] : memref<1x10x8x128xf32, #tpu.memory_space<vmem>>, vector<1x1x8x128xf32>
    %59 = vector.shape_cast %58 : vector<1x1x8x128xf32> to vector<8x128xf32>
    %60 = arith.maximumf %56, %59 : vector<8x128xf32>
    %c0_27 = arith.constant 0 : index
    %c8 = arith.constant 8 : index
    %61 = arith.index_cast %6 : i32 to index
    %c0_28 = arith.constant 0 : index
    %62 = vector.load %arg2[%c0_27, %c8, %61, %c0_28] : memref<1x10x8x128xf32, #tpu.memory_space<vmem>>, vector<1x1x8x128xf32>
    %63 = vector.shape_cast %62 : vector<1x1x8x128xf32> to vector<8x128xf32>
    %64 = arith.maximumf %60, %63 : vector<8x128xf32>
    %c0_29 = arith.constant 0 : index
    %c9 = arith.constant 9 : index
    %65 = arith.index_cast %6 : i32 to index
    %c0_30 = arith.constant 0 : index
    %66 = vector.load %arg2[%c0_29, %c9, %65, %c0_30] : memref<1x10x8x128xf32, #tpu.memory_space<vmem>>, vector<1x1x8x128xf32>
    %67 = vector.shape_cast %66 : vector<1x1x8x128xf32> to vector<8x128xf32>
    %68 = arith.maximumf %64, %67 : vector<8x128xf32>
    %cst_31 = arith.constant 0.000000e+00 : f32
    %69 = vector.broadcast %cst_31 : f32 to vector<8x128xf32>
    %cst_32 = arith.constant 0.000000e+00 : f32
    %70 = vector.broadcast %cst_32 : f32 to vector<8x128xf32>
    %c0_33 = arith.constant 0 : index
    %c0_34 = arith.constant 0 : index
    %71 = arith.index_cast %6 : i32 to index
    %c0_35 = arith.constant 0 : index
    %72 = vector.load %arg2[%c0_33, %c0_34, %71, %c0_35] : memref<1x10x8x128xf32, #tpu.memory_space<vmem>>, vector<1x1x8x128xf32>
    %73 = vector.shape_cast %72 : vector<1x1x8x128xf32> to vector<8x128xf32>
    %74 = arith.subf %73, %68 : vector<8x128xf32>
    %75 = math.exp %74 : vector<8x128xf32>
    %76 = arith.addf %69, %75 : vector<8x128xf32>
    %c0_i32_36 = arith.constant 0 : i32
    %77 = vector.broadcast %c0_i32_36 : i32 to vector<8x128xi32>
    %78 = arith.cmpi eq, %9, %77 : vector<8x128xi32>
    %79 = arith.select %78, %73, %70 : vector<8x128xi1>, vector<8x128xf32>
    %c0_37 = arith.constant 0 : index
    %c1_38 = arith.constant 1 : index
    %80 = arith.index_cast %6 : i32 to index
    %c0_39 = arith.constant 0 : index
    %81 = vector.load %arg2[%c0_37, %c1_38, %80, %c0_39] : memref<1x10x8x128xf32, #tpu.memory_space<vmem>>, vector<1x1x8x128xf32>
    %82 = vector.shape_cast %81 : vector<1x1x8x128xf32> to vector<8x128xf32>
    %83 = arith.subf %82, %68 : vector<8x128xf32>
    %84 = math.exp %83 : vector<8x128xf32>
    %85 = arith.addf %76, %84 : vector<8x128xf32>
    %c1_i32 = arith.constant 1 : i32
    %86 = vector.broadcast %c1_i32 : i32 to vector<8x128xi32>
    %87 = arith.cmpi eq, %9, %86 : vector<8x128xi32>
    %88 = arith.select %87, %82, %79 : vector<8x128xi1>, vector<8x128xf32>
    %c0_40 = arith.constant 0 : index
    %c2_41 = arith.constant 2 : index
    %89 = arith.index_cast %6 : i32 to index
    %c0_42 = arith.constant 0 : index
    %90 = vector.load %arg2[%c0_40, %c2_41, %89, %c0_42] : memref<1x10x8x128xf32, #tpu.memory_space<vmem>>, vector<1x1x8x128xf32>
    %91 = vector.shape_cast %90 : vector<1x1x8x128xf32> to vector<8x128xf32>
    %92 = arith.subf %91, %68 : vector<8x128xf32>
    %93 = math.exp %92 : vector<8x128xf32>
    %94 = arith.addf %85, %93 : vector<8x128xf32>
    %c2_i32_43 = arith.constant 2 : i32
    %95 = vector.broadcast %c2_i32_43 : i32 to vector<8x128xi32>
    %96 = arith.cmpi eq, %9, %95 : vector<8x128xi32>
    %97 = arith.select %96, %91, %88 : vector<8x128xi1>, vector<8x128xf32>
    %c0_44 = arith.constant 0 : index
    %c3_45 = arith.constant 3 : index
    %98 = arith.index_cast %6 : i32 to index
    %c0_46 = arith.constant 0 : index
    %99 = vector.load %arg2[%c0_44, %c3_45, %98, %c0_46] : memref<1x10x8x128xf32, #tpu.memory_space<vmem>>, vector<1x1x8x128xf32>
    %100 = vector.shape_cast %99 : vector<1x1x8x128xf32> to vector<8x128xf32>
    %101 = arith.subf %100, %68 : vector<8x128xf32>
    %102 = math.exp %101 : vector<8x128xf32>
    %103 = arith.addf %94, %102 : vector<8x128xf32>
    %c3_i32_47 = arith.constant 3 : i32
    %104 = vector.broadcast %c3_i32_47 : i32 to vector<8x128xi32>
    %105 = arith.cmpi eq, %9, %104 : vector<8x128xi32>
    %106 = arith.select %105, %100, %97 : vector<8x128xi1>, vector<8x128xf32>
    %c0_48 = arith.constant 0 : index
    %c4_49 = arith.constant 4 : index
    %107 = arith.index_cast %6 : i32 to index
    %c0_50 = arith.constant 0 : index
    %108 = vector.load %arg2[%c0_48, %c4_49, %107, %c0_50] : memref<1x10x8x128xf32, #tpu.memory_space<vmem>>, vector<1x1x8x128xf32>
    %109 = vector.shape_cast %108 : vector<1x1x8x128xf32> to vector<8x128xf32>
    %110 = arith.subf %109, %68 : vector<8x128xf32>
    %111 = math.exp %110 : vector<8x128xf32>
    %112 = arith.addf %103, %111 : vector<8x128xf32>
    %c4_i32_51 = arith.constant 4 : i32
    %113 = vector.broadcast %c4_i32_51 : i32 to vector<8x128xi32>
    %114 = arith.cmpi eq, %9, %113 : vector<8x128xi32>
    %115 = arith.select %114, %109, %106 : vector<8x128xi1>, vector<8x128xf32>
    %c0_52 = arith.constant 0 : index
    %c5_53 = arith.constant 5 : index
    %116 = arith.index_cast %6 : i32 to index
    %c0_54 = arith.constant 0 : index
    %117 = vector.load %arg2[%c0_52, %c5_53, %116, %c0_54] : memref<1x10x8x128xf32, #tpu.memory_space<vmem>>, vector<1x1x8x128xf32>
    %118 = vector.shape_cast %117 : vector<1x1x8x128xf32> to vector<8x128xf32>
    %119 = arith.subf %118, %68 : vector<8x128xf32>
    %120 = math.exp %119 : vector<8x128xf32>
    %121 = arith.addf %112, %120 : vector<8x128xf32>
    %c5_i32 = arith.constant 5 : i32
    %122 = vector.broadcast %c5_i32 : i32 to vector<8x128xi32>
    %123 = arith.cmpi eq, %9, %122 : vector<8x128xi32>
    %124 = arith.select %123, %118, %115 : vector<8x128xi1>, vector<8x128xf32>
    %c0_55 = arith.constant 0 : index
    %c6_56 = arith.constant 6 : index
    %125 = arith.index_cast %6 : i32 to index
    %c0_57 = arith.constant 0 : index
    %126 = vector.load %arg2[%c0_55, %c6_56, %125, %c0_57] : memref<1x10x8x128xf32, #tpu.memory_space<vmem>>, vector<1x1x8x128xf32>
    %127 = vector.shape_cast %126 : vector<1x1x8x128xf32> to vector<8x128xf32>
    %128 = arith.subf %127, %68 : vector<8x128xf32>
    %129 = math.exp %128 : vector<8x128xf32>
    %130 = arith.addf %121, %129 : vector<8x128xf32>
    %c6_i32_58 = arith.constant 6 : i32
    %131 = vector.broadcast %c6_i32_58 : i32 to vector<8x128xi32>
    %132 = arith.cmpi eq, %9, %131 : vector<8x128xi32>
    %133 = arith.select %132, %127, %124 : vector<8x128xi1>, vector<8x128xf32>
    %c0_59 = arith.constant 0 : index
    %c7_60 = arith.constant 7 : index
    %134 = arith.index_cast %6 : i32 to index
    %c0_61 = arith.constant 0 : index
    %135 = vector.load %arg2[%c0_59, %c7_60, %134, %c0_61] : memref<1x10x8x128xf32, #tpu.memory_space<vmem>>, vector<1x1x8x128xf32>
    %136 = vector.shape_cast %135 : vector<1x1x8x128xf32> to vector<8x128xf32>
    %137 = arith.subf %136, %68 : vector<8x128xf32>
    %138 = math.exp %137 : vector<8x128xf32>
    %139 = arith.addf %130, %138 : vector<8x128xf32>
    %c7_i32_62 = arith.constant 7 : i32
    %140 = vector.broadcast %c7_i32_62 : i32 to vector<8x128xi32>
    %141 = arith.cmpi eq, %9, %140 : vector<8x128xi32>
    %142 = arith.select %141, %136, %133 : vector<8x128xi1>, vector<8x128xf32>
    %c0_63 = arith.constant 0 : index
    %c8_64 = arith.constant 8 : index
    %143 = arith.index_cast %6 : i32 to index
    %c0_65 = arith.constant 0 : index
    %144 = vector.load %arg2[%c0_63, %c8_64, %143, %c0_65] : memref<1x10x8x128xf32, #tpu.memory_space<vmem>>, vector<1x1x8x128xf32>
    %145 = vector.shape_cast %144 : vector<1x1x8x128xf32> to vector<8x128xf32>
    %146 = arith.subf %145, %68 : vector<8x128xf32>
    %147 = math.exp %146 : vector<8x128xf32>
    %148 = arith.addf %139, %147 : vector<8x128xf32>
    %c8_i32_66 = arith.constant 8 : i32
    %149 = vector.broadcast %c8_i32_66 : i32 to vector<8x128xi32>
    %150 = arith.cmpi eq, %9, %149 : vector<8x128xi32>
    %151 = arith.select %150, %145, %142 : vector<8x128xi1>, vector<8x128xf32>
    %c0_67 = arith.constant 0 : index
    %c9_68 = arith.constant 9 : index
    %152 = arith.index_cast %6 : i32 to index
    %c0_69 = arith.constant 0 : index
    %153 = vector.load %arg2[%c0_67, %c9_68, %152, %c0_69] : memref<1x10x8x128xf32, #tpu.memory_space<vmem>>, vector<1x1x8x128xf32>
    %154 = vector.shape_cast %153 : vector<1x1x8x128xf32> to vector<8x128xf32>
    %155 = arith.subf %154, %68 : vector<8x128xf32>
    %156 = math.exp %155 : vector<8x128xf32>
    %157 = arith.addf %148, %156 : vector<8x128xf32>
    %c9_i32 = arith.constant 9 : i32
    %158 = vector.broadcast %c9_i32 : i32 to vector<8x128xi32>
    %159 = arith.cmpi eq, %9, %158 : vector<8x128xi32>
    %160 = arith.select %159, %154, %151 : vector<8x128xi1>, vector<8x128xf32>
    %161 = math.log %157 : vector<8x128xf32>
    %162 = arith.addf %68, %161 : vector<8x128xf32>
    %163 = arith.subf %160, %162 : vector<8x128xf32>
    %164 = arith.mulf %13, %163 : vector<8x128xf32>
    %165 = vector.shape_cast %164 : vector<8x128xf32> to vector<1x8x128xf32>
    %cst_70 = arith.constant dense<0.000000e+00> : vector<1xf32>
    %166 = vector.multi_reduction <add>, %165, %cst_70 [1, 2] : vector<1x8x128xf32> to vector<1xf32>
    %167 = vector.shape_cast %166 : vector<1xf32> to vector<1x1x1xf32>
    %168 = vector.extract %167[0, 0, 0] : f32 from vector<1x1x1xf32>
    %169 = arith.addf %cst, %168 : f32
    %170 = vector.shape_cast %13 : vector<8x128xf32> to vector<1x8x128xf32>
    %cst_71 = arith.constant dense<0.000000e+00> : vector<1xf32>
    %171 = vector.multi_reduction <add>, %170, %cst_71 [1, 2] : vector<1x8x128xf32> to vector<1xf32>
    %172 = vector.shape_cast %171 : vector<1xf32> to vector<1x1x1xf32>
    %173 = vector.extract %172[0, 0, 0] : f32 from vector<1x1x1xf32>
    %174 = arith.addf %cst_2, %173 : f32
    %c0_72 = arith.constant 0 : index
    %c0_73 = arith.constant 0 : index
    %175 = arith.index_cast %6 : i32 to index
    %c0_74 = arith.constant 0 : index
    %176 = vector.load %arg3[%c0_72, %c0_73, %175, %c0_74] : memref<1x10x8x128xf32, #tpu.memory_space<vmem>>, vector<1x1x8x128xf32>
    %177 = vector.shape_cast %176 : vector<1x1x8x128xf32> to vector<8x128xf32>
    %c0_75 = arith.constant 0 : index
    %c1_76 = arith.constant 1 : index
    %178 = arith.index_cast %6 : i32 to index
    %c0_77 = arith.constant 0 : index
    %179 = vector.load %arg3[%c0_75, %c1_76, %178, %c0_77] : memref<1x10x8x128xf32, #tpu.memory_space<vmem>>, vector<1x1x8x128xf32>
    %180 = vector.shape_cast %179 : vector<1x1x8x128xf32> to vector<8x128xf32>
    %181 = arith.maximumf %177, %180 : vector<8x128xf32>
    %c0_78 = arith.constant 0 : index
    %c2_79 = arith.constant 2 : index
    %182 = arith.index_cast %6 : i32 to index
    %c0_80 = arith.constant 0 : index
    %183 = vector.load %arg3[%c0_78, %c2_79, %182, %c0_80] : memref<1x10x8x128xf32, #tpu.memory_space<vmem>>, vector<1x1x8x128xf32>
    %184 = vector.shape_cast %183 : vector<1x1x8x128xf32> to vector<8x128xf32>
    %185 = arith.maximumf %181, %184 : vector<8x128xf32>
    %c0_81 = arith.constant 0 : index
    %c3_82 = arith.constant 3 : index
    %186 = arith.index_cast %6 : i32 to index
    %c0_83 = arith.constant 0 : index
    %187 = vector.load %arg3[%c0_81, %c3_82, %186, %c0_83] : memref<1x10x8x128xf32, #tpu.memory_space<vmem>>, vector<1x1x8x128xf32>
    %188 = vector.shape_cast %187 : vector<1x1x8x128xf32> to vector<8x128xf32>
    %189 = arith.maximumf %185, %188 : vector<8x128xf32>
    %c0_84 = arith.constant 0 : index
    %c4_85 = arith.constant 4 : index
    %190 = arith.index_cast %6 : i32 to index
    %c0_86 = arith.constant 0 : index
    %191 = vector.load %arg3[%c0_84, %c4_85, %190, %c0_86] : memref<1x10x8x128xf32, #tpu.memory_space<vmem>>, vector<1x1x8x128xf32>
    %192 = vector.shape_cast %191 : vector<1x1x8x128xf32> to vector<8x128xf32>
    %193 = arith.maximumf %189, %192 : vector<8x128xf32>
    %c0_87 = arith.constant 0 : index
    %c5_88 = arith.constant 5 : index
    %194 = arith.index_cast %6 : i32 to index
    %c0_89 = arith.constant 0 : index
    %195 = vector.load %arg3[%c0_87, %c5_88, %194, %c0_89] : memref<1x10x8x128xf32, #tpu.memory_space<vmem>>, vector<1x1x8x128xf32>
    %196 = vector.shape_cast %195 : vector<1x1x8x128xf32> to vector<8x128xf32>
    %197 = arith.maximumf %193, %196 : vector<8x128xf32>
    %c0_90 = arith.constant 0 : index
    %c6_91 = arith.constant 6 : index
    %198 = arith.index_cast %6 : i32 to index
    %c0_92 = arith.constant 0 : index
    %199 = vector.load %arg3[%c0_90, %c6_91, %198, %c0_92] : memref<1x10x8x128xf32, #tpu.memory_space<vmem>>, vector<1x1x8x128xf32>
    %200 = vector.shape_cast %199 : vector<1x1x8x128xf32> to vector<8x128xf32>
    %201 = arith.maximumf %197, %200 : vector<8x128xf32>
    %c0_93 = arith.constant 0 : index
    %c7_94 = arith.constant 7 : index
    %202 = arith.index_cast %6 : i32 to index
    %c0_95 = arith.constant 0 : index
    %203 = vector.load %arg3[%c0_93, %c7_94, %202, %c0_95] : memref<1x10x8x128xf32, #tpu.memory_space<vmem>>, vector<1x1x8x128xf32>
    %204 = vector.shape_cast %203 : vector<1x1x8x128xf32> to vector<8x128xf32>
    %205 = arith.maximumf %201, %204 : vector<8x128xf32>
    %c0_96 = arith.constant 0 : index
    %c8_97 = arith.constant 8 : index
    %206 = arith.index_cast %6 : i32 to index
    %c0_98 = arith.constant 0 : index
    %207 = vector.load %arg3[%c0_96, %c8_97, %206, %c0_98] : memref<1x10x8x128xf32, #tpu.memory_space<vmem>>, vector<1x1x8x128xf32>
    %208 = vector.shape_cast %207 : vector<1x1x8x128xf32> to vector<8x128xf32>
    %209 = arith.maximumf %205, %208 : vector<8x128xf32>
    %c0_99 = arith.constant 0 : index
    %c9_100 = arith.constant 9 : index
    %210 = arith.index_cast %6 : i32 to index
    %c0_101 = arith.constant 0 : index
    %211 = vector.load %arg3[%c0_99, %c9_100, %210, %c0_101] : memref<1x10x8x128xf32, #tpu.memory_space<vmem>>, vector<1x1x8x128xf32>
    %212 = vector.shape_cast %211 : vector<1x1x8x128xf32> to vector<8x128xf32>
    %213 = arith.maximumf %209, %212 : vector<8x128xf32>
    %cst_102 = arith.constant 0.000000e+00 : f32
    %214 = vector.broadcast %cst_102 : f32 to vector<8x128xf32>
    %cst_103 = arith.constant 0.000000e+00 : f32
    %215 = vector.broadcast %cst_103 : f32 to vector<8x128xf32>
    %cst_104 = arith.constant 0.000000e+00 : f32
    %216 = vector.broadcast %cst_104 : f32 to vector<8x128xf32>
    %c0_105 = arith.constant 0 : index
    %c0_106 = arith.constant 0 : index
    %217 = arith.index_cast %6 : i32 to index
    %c0_107 = arith.constant 0 : index
    %218 = vector.load %arg3[%c0_105, %c0_106, %217, %c0_107] : memref<1x10x8x128xf32, #tpu.memory_space<vmem>>, vector<1x1x8x128xf32>
    %219 = vector.shape_cast %218 : vector<1x1x8x128xf32> to vector<8x128xf32>
    %220 = arith.subf %219, %213 : vector<8x128xf32>
    %221 = math.exp %220 : vector<8x128xf32>
    %222 = arith.addf %214, %221 : vector<8x128xf32>
    %c0_i32_108 = arith.constant 0 : i32
    %223 = vector.broadcast %c0_i32_108 : i32 to vector<8x128xi32>
    %224 = arith.cmpi eq, %9, %223 : vector<8x128xi32>
    %225 = arith.select %224, %219, %215 : vector<8x128xi1>, vector<8x128xf32>
    %226 = arith.mulf %219, %219 : vector<8x128xf32>
    %227 = arith.addf %216, %226 : vector<8x128xf32>
    %c0_109 = arith.constant 0 : index
    %c1_110 = arith.constant 1 : index
    %228 = arith.index_cast %6 : i32 to index
    %c0_111 = arith.constant 0 : index
    %229 = vector.load %arg3[%c0_109, %c1_110, %228, %c0_111] : memref<1x10x8x128xf32, #tpu.memory_space<vmem>>, vector<1x1x8x128xf32>
    %230 = vector.shape_cast %229 : vector<1x1x8x128xf32> to vector<8x128xf32>
    %231 = arith.subf %230, %213 : vector<8x128xf32>
    %232 = math.exp %231 : vector<8x128xf32>
    %233 = arith.addf %222, %232 : vector<8x128xf32>
    %c1_i32_112 = arith.constant 1 : i32
    %234 = vector.broadcast %c1_i32_112 : i32 to vector<8x128xi32>
    %235 = arith.cmpi eq, %9, %234 : vector<8x128xi32>
    %236 = arith.select %235, %230, %225 : vector<8x128xi1>, vector<8x128xf32>
    %237 = arith.mulf %230, %230 : vector<8x128xf32>
    %238 = arith.addf %227, %237 : vector<8x128xf32>
    %c0_113 = arith.constant 0 : index
    %c2_114 = arith.constant 2 : index
    %239 = arith.index_cast %6 : i32 to index
    %c0_115 = arith.constant 0 : index
    %240 = vector.load %arg3[%c0_113, %c2_114, %239, %c0_115] : memref<1x10x8x128xf32, #tpu.memory_space<vmem>>, vector<1x1x8x128xf32>
    %241 = vector.shape_cast %240 : vector<1x1x8x128xf32> to vector<8x128xf32>
    %242 = arith.subf %241, %213 : vector<8x128xf32>
    %243 = math.exp %242 : vector<8x128xf32>
    %244 = arith.addf %233, %243 : vector<8x128xf32>
    %c2_i32_116 = arith.constant 2 : i32
    %245 = vector.broadcast %c2_i32_116 : i32 to vector<8x128xi32>
    %246 = arith.cmpi eq, %9, %245 : vector<8x128xi32>
    %247 = arith.select %246, %241, %236 : vector<8x128xi1>, vector<8x128xf32>
    %248 = arith.mulf %241, %241 : vector<8x128xf32>
    %249 = arith.addf %238, %248 : vector<8x128xf32>
    %c0_117 = arith.constant 0 : index
    %c3_118 = arith.constant 3 : index
    %250 = arith.index_cast %6 : i32 to index
    %c0_119 = arith.constant 0 : index
    %251 = vector.load %arg3[%c0_117, %c3_118, %250, %c0_119] : memref<1x10x8x128xf32, #tpu.memory_space<vmem>>, vector<1x1x8x128xf32>
    %252 = vector.shape_cast %251 : vector<1x1x8x128xf32> to vector<8x128xf32>
    %253 = arith.subf %252, %213 : vector<8x128xf32>
    %254 = math.exp %253 : vector<8x128xf32>
    %255 = arith.addf %244, %254 : vector<8x128xf32>
    %c3_i32_120 = arith.constant 3 : i32
    %256 = vector.broadcast %c3_i32_120 : i32 to vector<8x128xi32>
    %257 = arith.cmpi eq, %9, %256 : vector<8x128xi32>
    %258 = arith.select %257, %252, %247 : vector<8x128xi1>, vector<8x128xf32>
    %259 = arith.mulf %252, %252 : vector<8x128xf32>
    %260 = arith.addf %249, %259 : vector<8x128xf32>
    %c0_121 = arith.constant 0 : index
    %c4_122 = arith.constant 4 : index
    %261 = arith.index_cast %6 : i32 to index
    %c0_123 = arith.constant 0 : index
    %262 = vector.load %arg3[%c0_121, %c4_122, %261, %c0_123] : memref<1x10x8x128xf32, #tpu.memory_space<vmem>>, vector<1x1x8x128xf32>
    %263 = vector.shape_cast %262 : vector<1x1x8x128xf32> to vector<8x128xf32>
    %264 = arith.subf %263, %213 : vector<8x128xf32>
    %265 = math.exp %264 : vector<8x128xf32>
    %266 = arith.addf %255, %265 : vector<8x128xf32>
    %c4_i32_124 = arith.constant 4 : i32
    %267 = vector.broadcast %c4_i32_124 : i32 to vector<8x128xi32>
    %268 = arith.cmpi eq, %9, %267 : vector<8x128xi32>
    %269 = arith.select %268, %263, %258 : vector<8x128xi1>, vector<8x128xf32>
    %270 = arith.mulf %263, %263 : vector<8x128xf32>
    %271 = arith.addf %260, %270 : vector<8x128xf32>
    %c0_125 = arith.constant 0 : index
    %c5_126 = arith.constant 5 : index
    %272 = arith.index_cast %6 : i32 to index
    %c0_127 = arith.constant 0 : index
    %273 = vector.load %arg3[%c0_125, %c5_126, %272, %c0_127] : memref<1x10x8x128xf32, #tpu.memory_space<vmem>>, vector<1x1x8x128xf32>
    %274 = vector.shape_cast %273 : vector<1x1x8x128xf32> to vector<8x128xf32>
    %275 = arith.subf %274, %213 : vector<8x128xf32>
    %276 = math.exp %275 : vector<8x128xf32>
    %277 = arith.addf %266, %276 : vector<8x128xf32>
    %c5_i32_128 = arith.constant 5 : i32
    %278 = vector.broadcast %c5_i32_128 : i32 to vector<8x128xi32>
    %279 = arith.cmpi eq, %9, %278 : vector<8x128xi32>
    %280 = arith.select %279, %274, %269 : vector<8x128xi1>, vector<8x128xf32>
    %281 = arith.mulf %274, %274 : vector<8x128xf32>
    %282 = arith.addf %271, %281 : vector<8x128xf32>
    %c0_129 = arith.constant 0 : index
    %c6_130 = arith.constant 6 : index
    %283 = arith.index_cast %6 : i32 to index
    %c0_131 = arith.constant 0 : index
    %284 = vector.load %arg3[%c0_129, %c6_130, %283, %c0_131] : memref<1x10x8x128xf32, #tpu.memory_space<vmem>>, vector<1x1x8x128xf32>
    %285 = vector.shape_cast %284 : vector<1x1x8x128xf32> to vector<8x128xf32>
    %286 = arith.subf %285, %213 : vector<8x128xf32>
    %287 = math.exp %286 : vector<8x128xf32>
    %288 = arith.addf %277, %287 : vector<8x128xf32>
    %c6_i32_132 = arith.constant 6 : i32
    %289 = vector.broadcast %c6_i32_132 : i32 to vector<8x128xi32>
    %290 = arith.cmpi eq, %9, %289 : vector<8x128xi32>
    %291 = arith.select %290, %285, %280 : vector<8x128xi1>, vector<8x128xf32>
    %292 = arith.mulf %285, %285 : vector<8x128xf32>
    %293 = arith.addf %282, %292 : vector<8x128xf32>
    %c0_133 = arith.constant 0 : index
    %c7_134 = arith.constant 7 : index
    %294 = arith.index_cast %6 : i32 to index
    %c0_135 = arith.constant 0 : index
    %295 = vector.load %arg3[%c0_133, %c7_134, %294, %c0_135] : memref<1x10x8x128xf32, #tpu.memory_space<vmem>>, vector<1x1x8x128xf32>
    %296 = vector.shape_cast %295 : vector<1x1x8x128xf32> to vector<8x128xf32>
    %297 = arith.subf %296, %213 : vector<8x128xf32>
    %298 = math.exp %297 : vector<8x128xf32>
    %299 = arith.addf %288, %298 : vector<8x128xf32>
    %c7_i32_136 = arith.constant 7 : i32
    %300 = vector.broadcast %c7_i32_136 : i32 to vector<8x128xi32>
    %301 = arith.cmpi eq, %9, %300 : vector<8x128xi32>
    %302 = arith.select %301, %296, %291 : vector<8x128xi1>, vector<8x128xf32>
    %303 = arith.mulf %296, %296 : vector<8x128xf32>
    %304 = arith.addf %293, %303 : vector<8x128xf32>
    %c0_137 = arith.constant 0 : index
    %c8_138 = arith.constant 8 : index
    %305 = arith.index_cast %6 : i32 to index
    %c0_139 = arith.constant 0 : index
    %306 = vector.load %arg3[%c0_137, %c8_138, %305, %c0_139] : memref<1x10x8x128xf32, #tpu.memory_space<vmem>>, vector<1x1x8x128xf32>
    %307 = vector.shape_cast %306 : vector<1x1x8x128xf32> to vector<8x128xf32>
    %308 = arith.subf %307, %213 : vector<8x128xf32>
    %309 = math.exp %308 : vector<8x128xf32>
    %310 = arith.addf %299, %309 : vector<8x128xf32>
    %c8_i32_140 = arith.constant 8 : i32
    %311 = vector.broadcast %c8_i32_140 : i32 to vector<8x128xi32>
    %312 = arith.cmpi eq, %9, %311 : vector<8x128xi32>
    %313 = arith.select %312, %307, %302 : vector<8x128xi1>, vector<8x128xf32>
    %314 = arith.mulf %307, %307 : vector<8x128xf32>
    %315 = arith.addf %304, %314 : vector<8x128xf32>
    %c0_141 = arith.constant 0 : index
    %c9_142 = arith.constant 9 : index
    %316 = arith.index_cast %6 : i32 to index
    %c0_143 = arith.constant 0 : index
    %317 = vector.load %arg3[%c0_141, %c9_142, %316, %c0_143] : memref<1x10x8x128xf32, #tpu.memory_space<vmem>>, vector<1x1x8x128xf32>
    %318 = vector.shape_cast %317 : vector<1x1x8x128xf32> to vector<8x128xf32>
    %319 = arith.subf %318, %213 : vector<8x128xf32>
    %320 = math.exp %319 : vector<8x128xf32>
    %321 = arith.addf %310, %320 : vector<8x128xf32>
    %c9_i32_144 = arith.constant 9 : i32
    %322 = vector.broadcast %c9_i32_144 : i32 to vector<8x128xi32>
    %323 = arith.cmpi eq, %9, %322 : vector<8x128xi32>
    %324 = arith.select %323, %318, %313 : vector<8x128xi1>, vector<8x128xf32>
    %325 = arith.mulf %318, %318 : vector<8x128xf32>
    %326 = arith.addf %315, %325 : vector<8x128xf32>
    %327 = math.log %321 : vector<8x128xf32>
    %328 = arith.addf %213, %327 : vector<8x128xf32>
    %329 = arith.subf %324, %328 : vector<8x128xf32>
    %330 = arith.mulf %29, %329 : vector<8x128xf32>
    %331 = vector.shape_cast %330 : vector<8x128xf32> to vector<1x8x128xf32>
    %cst_145 = arith.constant dense<0.000000e+00> : vector<1xf32>
    %332 = vector.multi_reduction <add>, %331, %cst_145 [1, 2] : vector<1x8x128xf32> to vector<1xf32>
    %333 = vector.shape_cast %332 : vector<1xf32> to vector<1x1x1xf32>
    %334 = vector.extract %333[0, 0, 0] : f32 from vector<1x1x1xf32>
    %335 = arith.addf %cst_3, %334 : f32
    %336 = vector.shape_cast %29 : vector<8x128xf32> to vector<1x8x128xf32>
    %cst_146 = arith.constant dense<0.000000e+00> : vector<1xf32>
    %337 = vector.multi_reduction <add>, %336, %cst_146 [1, 2] : vector<1x8x128xf32> to vector<1xf32>
    %338 = vector.shape_cast %337 : vector<1xf32> to vector<1x1x1xf32>
    %339 = vector.extract %338[0, 0, 0] : f32 from vector<1x1x1xf32>
    %340 = arith.addf %cst_4, %339 : f32
    %cst_147 = arith.constant 1.000000e+00 : f32
    %341 = vector.broadcast %cst_147 : f32 to vector<8x128xf32>
    %342 = arith.subf %341, %29 : vector<8x128xf32>
    %343 = arith.mulf %342, %326 : vector<8x128xf32>
    %344 = vector.shape_cast %343 : vector<8x128xf32> to vector<1x8x128xf32>
    %cst_148 = arith.constant dense<0.000000e+00> : vector<1xf32>
    %345 = vector.multi_reduction <add>, %344, %cst_148 [1, 2] : vector<1x8x128xf32> to vector<1xf32>
    %346 = vector.shape_cast %345 : vector<1xf32> to vector<1x1x1xf32>
    %347 = vector.extract %346[0, 0, 0] : f32 from vector<1x1x1xf32>
    %348 = arith.addf %cst_5, %347 : f32
    %c1_i32_149 = arith.constant 1 : i32
    %c0_150 = arith.constant 0 : index
    %349 = memref.load %arg7[%c0_150] : memref<8xf32, #tpu.memory_space<smem>>
    %350 = arith.addf %349, %169 : f32
    %c0_151 = arith.constant 0 : index
    %351 = memref.load %arg7[%c0_151] : memref<8xf32, #tpu.memory_space<smem>>
    memref.store %350, %arg7[%c0_151] : memref<8xf32, #tpu.memory_space<smem>>
    %c1_152 = arith.constant 1 : index
    %352 = memref.load %arg7[%c1_152] : memref<8xf32, #tpu.memory_space<smem>>
    %353 = arith.addf %352, %174 : f32
    %c1_153 = arith.constant 1 : index
    %354 = memref.load %arg7[%c1_153] : memref<8xf32, #tpu.memory_space<smem>>
    memref.store %353, %arg7[%c1_153] : memref<8xf32, #tpu.memory_space<smem>>
    %c2_154 = arith.constant 2 : index
    %355 = memref.load %arg7[%c2_154] : memref<8xf32, #tpu.memory_space<smem>>
    %356 = arith.addf %355, %335 : f32
    %c2_155 = arith.constant 2 : index
    %357 = memref.load %arg7[%c2_155] : memref<8xf32, #tpu.memory_space<smem>>
    memref.store %356, %arg7[%c2_155] : memref<8xf32, #tpu.memory_space<smem>>
    %c3_156 = arith.constant 3 : index
    %358 = memref.load %arg7[%c3_156] : memref<8xf32, #tpu.memory_space<smem>>
    %359 = arith.addf %358, %340 : f32
    %c3_157 = arith.constant 3 : index
    %360 = memref.load %arg7[%c3_157] : memref<8xf32, #tpu.memory_space<smem>>
    memref.store %359, %arg7[%c3_157] : memref<8xf32, #tpu.memory_space<smem>>
    %c4_158 = arith.constant 4 : index
    %361 = memref.load %arg7[%c4_158] : memref<8xf32, #tpu.memory_space<smem>>
    %362 = arith.addf %361, %348 : f32
    %c4_159 = arith.constant 4 : index
    %363 = memref.load %arg7[%c4_159] : memref<8xf32, #tpu.memory_space<smem>>
    memref.store %362, %arg7[%c4_159] : memref<8xf32, #tpu.memory_space<smem>>
    %c1_i32_160 = arith.constant 1 : i32
    %364 = arith.cmpi eq, %arg0, %c1_i32_160 : i32
    %c0_i32_161 = arith.constant 0 : i32
    %365 = arith.cmpi eq, %arg1, %c0_i32_161 : i32
    %366 = arith.andi %364, %365 : i1
    %367 = arith.extui %366 : i1 to i32
    %c0_i32_162 = arith.constant 0 : i32
    %368 = arith.cmpi ne, %367, %c0_i32_162 : i32
    scf.if %368 {
      %c0_163 = arith.constant 0 : index
      %369 = memref.load %arg7[%c0_163] : memref<8xf32, #tpu.memory_space<smem>>
      %c1_164 = arith.constant 1 : index
      %370 = memref.load %arg7[%c1_164] : memref<8xf32, #tpu.memory_space<smem>>
      %c2_165 = arith.constant 2 : index
      %371 = memref.load %arg7[%c2_165] : memref<8xf32, #tpu.memory_space<smem>>
      %c3_166 = arith.constant 3 : index
      %372 = memref.load %arg7[%c3_166] : memref<8xf32, #tpu.memory_space<smem>>
      %cst_167 = arith.constant 0.000000e+00 : f32
      %373 = arith.subf %cst_167, %369 : f32
      %374 = arith.divf %373, %370 : f32
      %cst_168 = arith.constant 0.000000e+00 : f32
      %375 = arith.subf %cst_168, %371 : f32
      %cst_169 = arith.constant 1.000000e+00 : f32
      %376 = arith.maximumf %372, %cst_169 : f32
      %377 = arith.divf %375, %376 : f32
      %c4_170 = arith.constant 4 : index
      %378 = memref.load %arg7[%c4_170] : memref<8xf32, #tpu.memory_space<smem>>
      %cst_171 = arith.constant 1.95312503E-4 : f32
      %379 = arith.mulf %378, %cst_171 : f32
      %380 = arith.addf %377, %379 : f32
      %cst_172 = arith.constant 0.000000e+00 : f32
      %381 = arith.cmpf ogt, %372, %cst_172 : f32
      %cst_173 = arith.constant 0.000000e+00 : f32
      %382 = arith.select %381, %380, %cst_173 : f32
      %383 = vector.broadcast %374 : f32 to vector<1x1xf32>
      %c0_174 = arith.constant 0 : index
      %c0_175 = arith.constant 0 : index
      %384 = vector.load %arg5[%c0_174, %c0_175] : memref<1x1xf32, #tpu.memory_space<vmem>>, vector<1x1xf32>
      tpu.vector_store %arg5[%c0_174, %c0_175], %383 {strides = array<i32>} : memref<1x1xf32, #tpu.memory_space<vmem>>, vector<1x1xf32>,
      %385 = vector.broadcast %382 : f32 to vector<1x1xf32>
      %c0_176 = arith.constant 0 : index
      %c0_177 = arith.constant 0 : index
      %386 = vector.load %arg6[%c0_176, %c0_177] : memref<1x1xf32, #tpu.memory_space<vmem>>, vector<1x1xf32>
      tpu.vector_store %arg6[%c0_176, %c0_177], %385 {strides = array<i32>} : memref<1x1xf32, #tpu.memory_space<vmem>>, vector<1x1xf32>,
    } else {
    }
    return
  }
  func.func @transform_0(%arg0: i32, %arg1: i32) -> (i32, i32, i32, i32) {
    %c0_i32 = arith.constant 0 : i32
    %c0_i32_0 = arith.constant 0 : i32
    %c0_i32_1 = arith.constant 0 : i32
    return %arg0, %c0_i32, %arg1, %c0_i32_0 : i32, i32, i32, i32
  }
  func.func @transform_1(%arg0: i32, %arg1: i32) -> (i32, i32, i32, i32) {
    %c0_i32 = arith.constant 0 : i32
    %c0_i32_0 = arith.constant 0 : i32
    %c0_i32_1 = arith.constant 0 : i32
    return %arg0, %c0_i32, %arg1, %c0_i32_0 : i32, i32, i32, i32
  }
  func.func @transform_2(%arg0: i32, %arg1: i32) -> (i32, i32, i32, i32) {
    %c0_i32 = arith.constant 0 : i32
    %c0_i32_0 = arith.constant 0 : i32
    %c0_i32_1 = arith.constant 0 : i32
    return %arg0, %c0_i32, %arg1, %c0_i32_0 : i32, i32, i32, i32
  }
  func.func @transform_3(%arg0: i32, %arg1: i32) -> (i32, i32) {
    %c0_i32 = arith.constant 0 : i32
    %c0_i32_0 = arith.constant 0 : i32
    %c0_i32_1 = arith.constant 0 : i32
    return %c0_i32, %c0_i32_0 : i32, i32
  }
  func.func @transform_4(%arg0: i32, %arg1: i32) -> (i32, i32) {
    %c0_i32 = arith.constant 0 : i32
    %c0_i32_0 = arith.constant 0 : i32
    %c0_i32_1 = arith.constant 0 : i32
    return %c0_i32, %c0_i32_0 : i32, i32
  }
}

</mosaic_0001>

<bundles_post_ra>
// kernel: tpu_custom_call.1
= control target key start
LH: loop header
LB: loop body
LE: loop exit
PB: predicated region body
PF: predicated region fallthrough
CT: control target
= control target key end

     0   :  { %s1735_s0 = inlined_call_operand.hbm [shape: f32[2,10,8,128], index: 0, kind: input, shape index: {}]   ;;  %s1736_s1 = inlined_call_operand.hbm [shape: f32[2,10,8,128], index: 1, kind: input, shape index: {}]   ;;  %s1737_s2 = inlined_call_operand.hbm [shape: s32[2,1,8,128], index: 2, kind: input, shape index: {}]   ;;  %s1738_s3 = inlined_call_operand.hbm [shape: f32[1,1], index: 3, kind: output, shape index: {0}]   ;;  %s1739_s4 = inlined_call_operand.hbm [shape: f32[1,1], index: 4, kind: output, shape index: {1}]  }
   0x1   :  { %1744 = sst [smem:[#allocation16_spill]] %s1735_s0 }
   0x2   :  { %10 = vsyncpa [#allocation4], 0 }
   0x3   :  { %12 = vsyncpa [#allocation4 + $0x1], 0 }
   0x4   :  { %13 = vsyncpa [#allocation7], 0 }
   0x5   :  { %15 = vsyncpa [#allocation7 + $0x1], 0 }
   0x6   :  { %16 = vsyncpa [#allocation5], 0 }
   0x7   :  { %17 = vsyncpa [#allocation11], 0  ;;  %s1229_s15 = smov 0   ;;  %s1231_s16 = smov 0  }
   0x8   :  { %s1233_s17 = smov 0   ;;  %s1235_s18 = smov 0  }
   0x9   :  { %s1237_s19 = smov 0   ;;  %s1239_s20 = smov 0  }
   0xa LB: > { %s1258_s21 = sadd.s32 4294967295, %s1192_s20   ;;  %s35_s22 = sadd.s32 1, %s1188_s19  ;;  %s1192_s20 = sphi %s1239_s20, %s23_s20   ;;  %s1188_s19 = sphi %s1237_s19, %s1760_s19   ;;  %s1184_s18 = sphi %s1235_s18, %s1759_s18   ;;  %s1180_s17 = sphi %s1233_s17, %s1758_s17   ;;  %s1176_s16 = sphi %s1231_s16, %s1757_s16   ;;  %s1172_s15 = sphi %s1229_s15, %s1756_s15  }
   0xb   : > { %p37_p0 = scmp.ge.s32.totalorder %s35_s22, 2  ;;  %s44_s23 = sadd.s32 1, %s1180_s17 }
   0xc   : > { %p51_p1 = scmp.ne.s32.totalorder %s1180_s17, %s1176_s16  ;;  %p52_p2 = scmp.eq.s32.totalorder %s1192_s20, 0 }
   0xd   : > { %s1762_s22 = smov (%p37_p0, %s35_s22), 0  ;;  %p57_p4 = scmp.ne.s32.totalorder %s1176_s16, %s1172_s15 }
   0xe   : > { %p53_p3 = por %p52_p2, %p51_p1  ;;  %s39_s24 = ssub.s32 %s1188_s19, %s1762_s22 }
   0xf   : > { %p58_p5 = scmp.eq.s32.totalorder %s1258_s21, 0  ;;  %p42_p6 = scmp.eq.s32.totalorder %s39_s24, 0 }
  0x10   : > { %p880_p8 = scmp.lt.s32.totalorder %s1192_s20, 2  ;;  %s1280_s27 = sand.u32 1, %s1180_s17  }
  0x11   : > { %p1271_p7 = por %p58_p5, %p57_p4  ;;  %s833_s28 = smul.u32 1280, %s1188_s19 }
  0x12   : > { %s1277_s26 = scalar_select %p42_p6, %s1180_s17, %s44_s23  }
  0x13   : > { %s1745_s25 = scalar_select %p1271_p7, 1, 0 }
  0x14   : > { %s832_s29 = smul.u32 80, %s1280_s27  ;;  %p1284_p9 = pnand %p880_p8, %p53_p3 }
  0x15   : > { %s201_s5 = sand.u32 1, %s1192_s20   ;;  %s1294_s8 = scalar_lea.hbm %s1736_s1, %s833_s28 }
  0x16   : > { %s1746_s30 = scalar_select %p1284_p9, 1, 0 }
  0x17   : > { %s205_s9 = scalar_lea.vmem [#allocation6], %s832_s29  ;;  %s1301_s11 = scalar_lea.sflag [#allocation7], %s201_s5 }
  0x18   : > { %s213_s10 = sshll.u32 %s205_s9, 4  ;;  %s988_s12 = scalar_lea.hbm %s1294_s8, 1280  ;;  %s1298_s10 = int_to_ptr.vmem [resolvable:$true] %s213_s10 }
  0x19   : > { %p989_p11 = scmp.ne.s32.totalorder %s1294_s8, %s988_s12  ;;  %p1307_p12 = pneg %p1284_p9 }
  0x1a   : > { %s993_s23 = scalar_lea.hbm %s1736_s1, 2560  ;;  %p994_p1 = scmp.lt.u32.totalorder %s1294_s8, %s1736_s1 }
  0x1b   : > { %p991_p13 = pnand %p1307_p12, %p989_p11  ;;  %p995_p2 = scmp.lt.u32.totalorder %s993_s23, %s988_s12 }
  0x1c   : > { %p997_p4 = scmp.lt.u32.totalorder %s988_s12, %s1294_s8 }
  0x1d   : > { %p992_p0 = pneg %p991_p13  ;;  %p996_p3 = por %p995_p2, %p994_p1 }
  0x1f   : > { %p998_p5 = por %p997_p4, %p996_p3 }
  0x21   : > { %p999_p6 = pnand %p998_p5, %p992_p0 }
  0x23   : > { %1002 = shalt.err (!%p999_p6)
}
  0x24   : > { %s1003_s5 = scalar_lea.vmem %s1298_s10, 1280  ;;  %s1194_s7 = smov [#allocation6]  }
  0x25   : > { %p1004_p8 = scmp.ne.s32.totalorder %s1298_s10, %s1003_s5  ;;  %s1008_s9 = sshll.u32 %s1194_s7, 4  ;;  %s1009_s9 = int_to_ptr.vmem [resolvable:$false] %s1008_s9 }
  0x26   : > { %s1010_s14 = scalar_lea.vmem %s1009_s9, 2560  ;;  %p1011_p10 = scmp.lt.s32.totalorder %s1298_s10, %s1009_s9 }
  0x27   : > { %p1006_p11 = pnand %p1004_p8, %p1307_p12  ;;  %p1012_p7 = scmp.lt.s32.totalorder %s1010_s14, %s1003_s5 }
  0x29   : > { %p1007_p13 = pneg %p1006_p11  ;;  %p1013_p1 = por %p1012_p7, %p1011_p10 }
  0x2b   : > { %p1014_p2 = pnand %p1013_p1, %p1007_p13 }
  0x2d   : > { %1017 = shalt.err (!%p1014_p2)
}
  0x2e   : > { %s1741_s12 = smov 128   ;;  %s1742_s15 = smov 8  }
  0x2f   : > { %876 = dma.hbm_to_vmem [thread:$0]  (!%p1284_p9), %s1294_s8, 1280, %s1298_s10, %s1301_s11, %s1741_s12, %s1741_s12, %s1742_s15  }
  0x30   : > { %p240_p7 = scmp.lt.s32.totalorder %s1192_s20, 3  ;;  %p1748_p10 = scmp.ge.s32.totalorder %s1192_s20, 1 }
  0x31   : > { %s1750_s0 = sld [smem:[#allocation16_spill]]  ;;  %s183_s7 = scalar_lea.vmem [#allocation3], %s832_s29 }
  0x32   : > { %p1337_p0 = pnand %p1748_p10, %p240_p7  ;;  %s191_s9 = sshll.u32 %s183_s7, 4  ;;  %s1350_s9 = int_to_ptr.vmem [resolvable:$true] %s191_s9 }
  0x33   : > { %s790_s8 = sshll.u32 %s1280_s27, 3  ;;  %s180_s10 = scalar_lea.sflag [#allocation4], %s1280_s27 }
  0x34   : > { %s1749_s23 = scalar_select %p1337_p0, 1, 0 }
  0x37   : > { %s1346_s5 = scalar_lea.hbm %s1750_s0, %s833_s28  ;;  %s1023_s28 = scalar_lea.hbm %s1750_s0, 2560 }
  0x38   : > { %s1018_s14 = scalar_lea.hbm %s1346_s5, 1280  ;;  %p1024_p6 = scmp.lt.u32.totalorder %s1346_s5, %s1750_s0 }
  0x39   : > { %p1019_p3 = scmp.ne.s32.totalorder %s1346_s5, %s1018_s14  ;;  %p1025_p8 = scmp.lt.u32.totalorder %s1023_s28, %s1018_s14 }
  0x3a   : > { %p1027_p13 = scmp.lt.u32.totalorder %s1018_s14, %s1346_s5 }
  0x3b   : > { %p1021_p4 = pnand %p1019_p3, %p1307_p12  ;;  %p1026_p11 = por %p1025_p8, %p1024_p6 }
  0x3d   : > { %p1022_p5 = pneg %p1021_p4  ;;  %p1028_p1 = por %p1027_p13, %p1026_p11 }
  0x3f   : > { %p1029_p2 = pnand %p1028_p1, %p1022_p5 }
  0x41   : > { %1032 = shalt.err (!%p1029_p2)
}
  0x42   : > { %s1033_s29 = scalar_lea.vmem %s1350_s9, 1280  ;;  %s1197_s12 = smov [#allocation3]  }
  0x43   : > { %p1034_p7 = scmp.ne.s32.totalorder %s1350_s9, %s1033_s29  ;;  %s1038_s7 = sshll.u32 %s1197_s12, 4  ;;  %s1039_s7 = int_to_ptr.vmem [resolvable:$false] %s1038_s7 }
  0x44   : > { %s1040_s15 = scalar_lea.vmem %s1039_s7, 2560  ;;  %p1041_p4 = scmp.lt.s32.totalorder %s1350_s9, %s1039_s7 }
  0x45   : > { %p1036_p10 = pnand %p1034_p7, %p1307_p12  ;;  %p1042_p0 = scmp.lt.s32.totalorder %s1040_s15, %s1033_s29 }
  0x47   : > { %p1037_p3 = pneg %p1036_p10  ;;  %p1043_p6 = por %p1042_p0, %p1041_p4 }
  0x49   : > { %p1044_p8 = pnand %p1043_p6, %p1037_p3 }
  0x4b   : > { %1047 = shalt.err (!%p1044_p8)
}
  0x4c   : > { %s1751_s14 = smov 8   ;;  %s1752_s24 = smov 128  }
  0x4d   : > { %873 = dma.hbm_to_vmem [thread:$0]  (!%p1284_p9), %s1346_s5, 1280, %s1350_s9, %s180_s10, %s1752_s24, %s1752_s24, %s1751_s14  }
  0x4e   : > { %s791_s28 = sshll.u32 %s1188_s19, 7  ;;  %s227_s7 = scalar_lea.vmem [#allocation8], %s790_s8 }
  0x4f   : > { %s1384_s29 = scalar_lea.hbm %s1737_s2, %s791_s28  ;;  %s235_s15 = sshll.u32 %s227_s7, 4  ;;  %s236_s15 = int_to_ptr.vmem [resolvable:$true] %s235_s15 }
  0x50   : > { %s1048_s0 = scalar_lea.hbm %s1384_s29, 128  ;;  %s1053_s10 = scalar_lea.hbm %s1737_s2, 256 }
  0x51   : > { %p1049_p0 = scmp.ne.s32.totalorder %s1384_s29, %s1048_s0  ;;  %p1054_p13 = scmp.lt.u32.totalorder %s1384_s29, %s1737_s2 }
  0x52   : > { %p1055_p1 = scmp.lt.u32.totalorder %s1053_s10, %s1048_s0  ;;  %p1057_p7 = scmp.lt.u32.totalorder %s1048_s0, %s1384_s29 }
  0x53   : > { %p1051_p5 = pnand %p1049_p0, %p1307_p12 }
  0x54   : > { %p1056_p2 = por %p1055_p1, %p1054_p13 }
  0x55   : > { %p1052_p11 = pneg %p1051_p5 }
  0x56   : > { %p1058_p10 = por %p1057_p7, %p1056_p2 }
  0x58   : > { %p1059_p3 = pnand %p1058_p10, %p1052_p11 }
  0x5a   : > { %1062 = shalt.err (!%p1059_p3)
}
  0x5b   : > { %s1063_s27 = scalar_lea.vmem %s236_s15, 128  ;;  %s1198_s8 = smov [#allocation8]  }
  0x5c   : > { %p1064_p4 = scmp.ne.s32.totalorder %s236_s15, %s1063_s27  ;;  %s1068_s28 = sshll.u32 %s1198_s8, 4  ;;  %s1069_s28 = int_to_ptr.vmem [resolvable:$false] %s1068_s28 }
  0x5d   : > { %s1070_s6 = scalar_lea.vmem %s1069_s28, 256  ;;  %p1071_p0 = scmp.lt.s32.totalorder %s236_s15, %s1069_s28 }
  0x5e   : > { %p1066_p6 = pnand %p1064_p4, %p1307_p12  ;;  %p1072_p5 = scmp.lt.s32.totalorder %s1070_s6, %s1063_s27 }
  0x60   : > { %p1067_p8 = pneg %p1066_p6  ;;  %p1073_p9 = por %p1072_p5, %p1071_p0 }
  0x62   : > { %p1074_p1 = pnand %p1073_p9, %p1067_p8 }
  0x64   : > { %1077 = shalt.err (!%p1074_p1)
}
  0x65   : > { %p1753_p13 = scmp.ne.s32.totalorder %s1746_s30, 0  ;;  %p1754_p11 = scmp.ne.s32.totalorder %s1749_s23, 0 }
  0x66   : > { %s246_s0 = sand.u32 (!%p1754_p11), 1, %s1176_s16   ;;  %p1755_p12 = scmp.ne.s32.totalorder (!%p1754_p11), %s1745_s25, 0 }
  0x67   : > { %879 = dma.hbm_to_vmem [thread:$0]  (!%p1753_p13), %s1384_s29, 128, %s236_s15, %s1301_s11  }
  0x68   : > { %244 = sbr.rel (%p1754_p11) target bundleno = 536 (0x218), region = 32  ;;  %s247_s12 = scalar_lea.sflag (!%p1754_p11), [#allocation4], %s246_s0 }
  0x69   : > { %s836_s13 = smul.u32 (!%p1754_p11), 80, %s246_s0 }
  0x6b   : > { %s1409_s7 = scalar_lea.vmem (!%p1754_p11), [#allocation3], %s836_s13 }
  0x6f   : > { %1155 = dma.done.wait (%p1755_p12), %s247_s12, 1280  }
  0x70   : > { %1157 = vsyncadd (%p1755_p12), %s247_s12, 4294966016  ;;  %s255_s30 = sand.u32 1, %s1258_s21   ;;  %s1416_s11 = scalar_lea.vmem [#allocation6], %s836_s13 }
  0x71   : > { %s256_s5 = scalar_lea.sflag [#allocation7], %s255_s30 }
  0x72   : > { %1159 = dma.done.wait (%p1755_p12), %s256_s5, 1408  }
  0x73   : > { %1161 = vsyncadd (%p1755_p12), %s256_s5, 4294965888  ;;  %s793_s23 = sshll.u32 %s246_s0, 3  ;;  %v1425_v1 = vld [vmem:[%s1409_s7] sm:$0xff]  ;;  %v1428_v2 = vld [vmem:[%s1409_s7 + $0x8] sm:$0xff]  ;;  %v1199_v4 = vmov 0.0   ;;  %p298_p9 = scmp.eq.s32.totalorder %s1184_s18, 0 }
  0x74   : > { %s268_s29 = scalar_lea.vmem [#allocation8], %s793_s23  ;;  %v1434_v3 = vld [vmem:[%s1409_s7 + $0x10] sm:$0xff]  ;;  %v333_v6 = vmax.f32 %v1425_v1, %v1428_v2  ;;  %v1450_v7 = vld [vmem:[%s1409_s7 + $0x18] sm:$0xff]  ;;  %v1457_v9 = vld [vmem:[%s1416_s11] sm:$0xff]  ;;  %s1200_s25 = smov 0.0  }
  0x75   : > { %v1422_v0 = vld [vmem:[%s268_s29] sm:$0xff]  ;;  %v1460_v10 = vld [vmem:[%s1416_s11 + $0x8] sm:$0xff]  ;;  %v1470_v13 = vld [vmem:[%s1416_s11 + $0x10] sm:$0xff]  ;;  %857 = sst [smem:[#allocation2]] (%p298_p9), %s1200_s25  ;;  %p601_p2 = scmp.eq.s32.totalorder %s1184_s18, 1 }
  0x76   : > { %vm315_vm0 = vcmp.ne.s32.totalorder %v1422_v0, 0  ;;  %vm318_vm1 = vcmp.eq.s32.totalorder %v1422_v0, 2  ;;  %vm319_vm2 = vcmp.eq.s32.totalorder %v1422_v0, 3  ;;  %vm321_vm4 = vcmp.eq.s32.totalorder %v1422_v0, 4  ;;  %v1465_v11 = vld [vmem:[%s1409_s7 + $0x20] sm:$0xff]  ;;  %v1476_v16 = vld [vmem:[%s1416_s11 + $0x18] sm:$0xff] }
  0x77   : > { %v1436_v5 = vsel %vm315_vm0, 1.0, %v1199_v4  ;;  %vm320_vm3 = vmor %vm318_vm1, %vm319_vm2  ;;  %vm323_vm6 = vcmp.eq.s32.totalorder %v1422_v0, 6  ;;  %vm325_vm8 = vcmp.eq.s32.totalorder %v1422_v0, 7  ;;  %v337_v8 = vmax.f32 %v333_v6, %v1434_v3  ;;  %v1479_v17 = vld [vmem:[%s1409_s7 + $0x28] sm:$0xff]  ;;  %v1484_v20 = vld [vmem:[%s1416_s11 + $0x20] sm:$0xff]  ;;  %858 = sst [smem:[#allocation2 + $0x1]] (%p298_p9), %s1200_s25 }
  0x78   : > { %436 = vadd.xlane.f32.xlu0 %v1436_v5  ;;  %vm322_vm5 = vmor %vm320_vm3, %vm321_vm4  ;;  %v449_v12 = vmax.f32 %v1457_v9, %v1460_v10  ;;  %v1487_v21 = vld [vmem:[%s1409_s7 + $0x30] sm:$0xff]  ;;  %v1492_v24 = vld [vmem:[%s1416_s11 + $0x28] sm:$0xff]  ;;  %vm370_vm10 = vcmp.eq.s32.totalorder %v1422_v0, 0  ;;  %vm376_vm11 = vcmp.eq.s32.totalorder %v1422_v0, 1  ;;  %vm397_vm12 = vcmp.eq.s32.totalorder %v1422_v0, 5  ;;  %859 = sst [smem:[#allocation2 + $0x2]] (%p298_p9), %s1200_s25 }
  0x79   : > { %vm324_vm7 = vmor %vm322_vm5, %vm323_vm6  ;;  %v341_v15 = vmax.f32 %v337_v8, %v1450_v7  ;;  %v1497_v27 = vld [vmem:[%s1416_s11 + $0x30] sm:$0xff]  ;;  %v1500_v28 = vld [vmem:[%s1409_s7 + $0x38] sm:$0xff]  ;;  %vm413_vm13 = vcmp.eq.s32.totalorder %v1422_v0, 8  ;;  %vm419_vm14 = vcmp.eq.s32.totalorder %v1422_v0, 9  ;;  %860 = sst [smem:[#allocation2 + $0x3]] (%p298_p9), %s1200_s25  ;;  %s581_s15 = sld [smem:[#allocation2]] }
  0x7a   : > { %vm326_vm9 = vmor %vm324_vm7, %vm325_vm8  ;;  %v452_v18 = vmax.f32 %v449_v12, %v1470_v13  ;;  %v1504_v30 = vld [vmem:[%s1416_s11 + $0x38] sm:$0xff]  ;;  %v1509_v33 = vld [vmem:[%s1416_s11 + $0x40] sm:$0xff]  ;;  %861 = sst [smem:[#allocation2 + $0x4]] (%p298_p9), %s1200_s25  ;;  %s815_s9 = sld [smem:[#allocation2 + $0x1]]  ;;  %vm627_vm15 = vcmask (%p601_p2), 0  }
  0x7b   : > { %v1472_v14 = vsel %vm326_vm9, 1.0, %v1199_v4  ;;  %v345_v19 = vmax.f32 %v341_v15, %v1465_v11  ;;  %v1513_v35 = vld [vmem:[%s1409_s7 + $0x40] sm:$0xff]  ;;  %v1516_v36 = vld [vmem:[%s1416_s11 + $0x48] sm:$0xff]  ;;  %s816_s10 = sld [smem:[#allocation2 + $0x2]]  ;;  %s817_s14 = sld [smem:[#allocation2 + $0x3]] }
  0x7c   : > { %v455_v22 = vmax.f32 %v452_v18, %v1476_v16  ;;  %v1524_v40 = vld [vmem:[%s1409_s7 + $0x48] sm:$0xff]  ;;  %s818_s27 = sld [smem:[#allocation2 + $0x4]]  ;;  %s1201_s29 = smov (%p601_p2), 1.0  }
  0x7d   : > { %v349_v23 = vmax.f32 %v345_v19, %v1479_v17 }
  0x7e   : > { %v458_v25 = vmax.f32 %v455_v22, %v1484_v20 }
  0x7f   : > { %v353_v26 = vmax.f32 %v349_v23, %v1487_v21 }
  0x80   : > { %v461_v29 = vmax.f32 %v458_v25, %v1492_v24 }
  0x81   : > { %v357_v32 = vmax.f32 %v353_v26, %v1500_v28 }
  0x82   : > { %v464_v31 = vmax.f32 %v461_v29, %v1497_v27 }
  0x83   : > { %v361_v38 = vmax.f32 %v357_v32, %v1513_v35 }
  0x84   : > { %v467_v34 = vmax.f32 %v464_v31, %v1504_v30 }
  0x85   : > { %v1537_v46 = vmax.f32 %v361_v38, %v1524_v40 }
  0x86   : > { %v470_v37 = vmax.f32 %v467_v34, %v1509_v33 }
  0x87   : > { %v366_v57 = vsub.f32 %v1425_v1, %v1537_v46  ;;  %v372_v59 = vsub.f32 %v1428_v2, %v1537_v46  ;;  %v378_v61 = vsub.f32 %v1434_v3, %v1537_v46  ;;  %v383_v63 = vsub.f32 %v1450_v7, %v1537_v46 }
  0x88   : > { %v1521_v39 = vmax.f32 %v470_v37, %v1516_v36  ;;  %v388_v12 = vsub.f32 %v1465_v11, %v1537_v46  ;;  %v393_v19 = vsub.f32 %v1479_v17, %v1537_v46  ;;  %v399_v29 = vsub.f32 %v1487_v21, %v1537_v46 }
  0x89   : > { %v367_v6 = vmul.f32 1.442695, %v366_v57  ;;  %v373_v8 = vmul.f32 1.442695, %v372_v59  ;;  %v379_v15 = vmul.f32 1.442695, %v378_v61  ;;  %v404_v38 = vsub.f32 %v1500_v28, %v1537_v46 }
  0x8a   : > { %v474_v41 = vsub.f32 %v1457_v9, %v1521_v39  ;;  %v481_v42 = vsub.f32 %v1460_v10, %v1521_v39  ;;  %v488_v43 = vsub.f32 %v1470_v13, %v1521_v39  ;;  %v495_v44 = vsub.f32 %v1476_v16, %v1521_v39 }
  0x8b   : > { %v502_v45 = vsub.f32 %v1484_v20, %v1521_v39  ;;  %v509_v50 = vsub.f32 %v1492_v24, %v1521_v39  ;;  %v516_v52 = vsub.f32 %v1497_v27, %v1521_v39  ;;  %v523_v53 = vsub.f32 %v1504_v30, %v1521_v39 }
  0x8c   : > { %v475_v47 = vmul.f32 1.442695, %v474_v41  ;;  %v482_v48 = vmul.f32 1.442695, %v481_v42  ;;  %v489_v49 = vmul.f32 1.442695, %v488_v43  ;;  %v530_v55 = vsub.f32 %v1509_v33, %v1521_v39 }
  0x8d   : > { %v496_v51 = vmul.f32 1.442695, %v495_v44  ;;  %v503_v54 = vmul.f32 1.442695, %v502_v45  ;;  %v510_v56 = vmul.f32 1.442695, %v509_v50  ;;  %v537_v4 = vsub.f32 %v1516_v36, %v1521_v39 }
  0x8e   : > { %940 = vpow2.f32 %v475_v47  ;;  %v517_v58 = vmul.f32 1.442695, %v516_v52  ;;  %v524_v60 = vmul.f32 1.442695, %v523_v53  ;;  %v531_v62 = vmul.f32 1.442695, %v530_v55 }
  0x8f   : > { %942 = vpow2.f32 %v482_v48  ;;  %v384_v18 = vmul.f32 1.442695, %v383_v63  ;;  %v538_v23 = vmul.f32 1.442695, %v537_v4  ;;  %v389_v26 = vmul.f32 1.442695, %v388_v12 }
  0x90   : > { %944 = vpow2.f32 %v489_v49  ;;  %v394_v37 = vmul.f32 1.442695, %v393_v19  ;;  %v478_v43 = vsel %vm370_vm10, %v1457_v9, 0.0  ;;  %v400_v44 = vmul.f32 1.442695, %v399_v29 }
  0x91   : > { %946 = vpow2.f32 %v496_v51  ;;  %v409_v45 = vsub.f32 %v1513_v35, %v1537_v46  ;;  %v405_v50 = vmul.f32 1.442695, %v404_v38  ;;  %v415_v51 = vsub.f32 %v1524_v40, %v1537_v46 }
  0x92   : > { %948 = vpow2.f32 %v503_v54  ;;  %v485_v53 = vsel %vm376_vm11, %v1460_v10, %v478_v43 }
  0x93   : > { %950 = vpow2.f32 %v510_v56  ;;  %v486_v56 = vmul.f32 %v1460_v10, %v1460_v10  ;;  %v410_v57 = vmul.f32 1.442695, %v409_v45  ;;  %v416_v63 = vmul.f32 1.442695, %v415_v51 }
  0x94   : > { %952 = vpow2.f32 %v517_v58  ;;  %v479_v58 = vmul.f32 %v1457_v9, %v1457_v9  ;;  %v493_v10 = vmul.f32 %v1470_v13, %v1470_v13 }
  0x95   : > { %954 = vpow2.f32 %v524_v60 }
  0x96   : > { %956 = vpow2.f32 %v531_v62  ;;  %v492_v62 = vsel %vm318_vm1, %v1470_v13, %v485_v53 }
  0x97   : > { %958 = vpow2.f32 %v367_v6  ;;  %v499_v9 = vsel %vm319_vm2, %v1476_v16, %v492_v62 }
  0x98   : > { %v941_v22 = vpop.eup %940  ;;  %960 = vpow2.f32 %v373_v8  ;;  %v506_v13 = vsel %vm321_vm4, %v1484_v20, %v499_v9 }
  0x99   : > { %v943_v25 = vpop.eup %942  ;;  %962 = vpow2.f32 %v379_v15  ;;  %v487_v15 = vadd.f32 %v486_v56, %v479_v58 }
  0x9a   : > { %v945_v31 = vpop.eup %944  ;;  %v484_v32 = vadd.f32 %v943_v25, %v941_v22  ;;  %964 = vpow2.f32 %v384_v18  ;;  %v371_v25 = vsel %vm370_vm10, %v1425_v1, 0.0 }
  0x9b   : > { %v947_v34 = vpop.eup %946  ;;  %966 = vpow2.f32 %v538_v23 }
  0x9c   : > { %v491_v41 = vadd.f32 %v945_v31, %v484_v32  ;;  %v949_v42 = vpop.eup %948  ;;  %968 = vpow2.f32 %v389_v26  ;;  %v494_v32 = vadd.f32 %v493_v10, %v487_v15  ;;  %v542_v15 = vmul.f32 %v1516_v36, %v1516_v36 }
  0x9d   : > { %v951_v47 = vpop.eup %950  ;;  %970 = vpow2.f32 %v394_v37  ;;  %v377_v37 = vsel %vm376_vm11, %v1428_v2, %v371_v25 }
  0x9e   : > { %v498_v48 = vadd.f32 %v947_v34, %v491_v41  ;;  %v953_v49 = vpop.eup %952  ;;  %972 = vpow2.f32 %v400_v44  ;;  %v500_v34 = vmul.f32 %v1476_v16, %v1476_v16  ;;  %v382_v45 = vsel %vm318_vm1, %v1434_v3, %v377_v37 }
  0x9f   : > { %v955_v52 = vpop.eup %954  ;;  %974 = vpow2.f32 %v405_v50  ;;  %v507_v16 = vmul.f32 %v1484_v20, %v1484_v20  ;;  %v387_v50 = vsel %vm319_vm2, %v1450_v7, %v382_v45  ;;  %v514_v3 = vmul.f32 %v1492_v24, %v1492_v24 }
  0xa0   : > { %v505_v54 = vadd.f32 %v949_v42, %v498_v48  ;;  %v957_v55 = vpop.eup %956  ;;  %976 = vpow2.f32 %v410_v57  ;;  %v513_v42 = vsel %vm397_vm12, %v1492_v24, %v506_v13  ;;  %v521_v24 = vmul.f32 %v1497_v27, %v1497_v27 }
  0xa1   : > { %v959_v59 = vpop.eup %958  ;;  %978 = vpow2.f32 %v416_v63 }
  0xa2   : > { %v512_v60 = vadd.f32 %v951_v47, %v505_v54  ;;  %v961_v61 = vpop.eup %960  ;;  %v501_v47 = vadd.f32 %v500_v34, %v494_v32 }
  0xa3   : > { %v963_v4 = vpop.eup %962  ;;  %v375_v8 = vadd.f32 %v961_v61, %v959_v59 }
  0xa4   : > { %v519_v6 = vadd.f32 %v953_v49, %v512_v60  ;;  %v965_v12 = vpop.eup %964  ;;  %v520_v49 = vsel %vm323_vm6, %v1497_v27, %v513_v42  ;;  %v508_v53 = vadd.f32 %v507_v16, %v501_v47  ;;  %v528_v27 = vmul.f32 %v1504_v30, %v1504_v30 }
  0xa5   : > { %v967_v18 = vpop.eup %966  ;;  %v381_v22 = vadd.f32 %v963_v4, %v375_v8  ;;  %v527_v20 = vsel %vm325_vm8, %v1504_v30, %v520_v49 }
  0xa6   : > { %v526_v19 = vadd.f32 %v955_v52, %v519_v6  ;;  %v969_v23 = vpop.eup %968  ;;  %v534_v7 = vsel %vm413_vm13, %v1509_v33, %v527_v20  ;;  %v515_v57 = vadd.f32 %v514_v3, %v508_v53 }
  0xa7   : > { %v386_v29 = vadd.f32 %v965_v12, %v381_v22  ;;  %v971_v31 = vpop.eup %970  ;;  %v535_v12 = vmul.f32 %v1509_v33, %v1509_v33 }
  0xa8   : > { %v533_v26 = vadd.f32 %v957_v55, %v526_v19  ;;  %v973_v41 = vpop.eup %972  ;;  %v392_v55 = vsel %vm321_vm4, %v1465_v11, %v387_v50  ;;  %v541_v11 = vsel %vm419_vm14, %v1516_v36, %v534_v7  ;;  %v522_v63 = vadd.f32 %v521_v24, %v515_v57 }
  0xa9   : > { %v391_v1 = vadd.f32 %v969_v23, %v386_v29  ;;  %v975_v44 = vpop.eup %974  ;;  %v398_v59 = vsel %vm397_vm12, %v1479_v17, %v392_v55  ;;  %v569_v19 = vsub.f32 1.0, %v1472_v14 }
  0xaa   : > { %v540_v38 = vadd.f32 %v967_v18, %v533_v26  ;;  %v977_v2 = vpop.eup %976  ;;  %v403_v61 = vsel %vm323_vm6, %v1487_v21, %v398_v59  ;;  %v529_v8 = vadd.f32 %v528_v27, %v522_v63 }
  0xab   : > { %v396_v43 = vadd.f32 %v971_v31, %v391_v1  ;;  %v979_v52 = vpop.eup %978  ;;  %v408_v17 = vsel %vm325_vm8, %v1500_v28, %v403_v61 }
  0xac   : > { %980 = vlog2.f32 %v540_v38  ;;  %v414_v21 = vsel %vm413_vm13, %v1513_v35, %v408_v17  ;;  %v536_v30 = vadd.f32 %v535_v12, %v529_v8 }
  0xad   : > { %v402_v48 = vadd.f32 %v973_v41, %v396_v43  ;;  %v420_v28 = vsel %vm419_vm14, %v1524_v40, %v414_v21 }
  0xae   : > { %v543_v9 = vadd.f32 %v542_v15, %v536_v30 }
  0xaf   : > { %v407_v51 = vadd.f32 %v975_v44, %v402_v48 }
  0xb0   : > { %v570_v22 = vmul.f32 %v569_v19, %v543_v9 }
  0xb1   : > { %v412_v54 = vadd.f32 %v977_v2, %v407_v51 }
  0xb3   : > { %v418_v56 = vadd.f32 %v979_v52, %v412_v54 }
  0xb5   : > { %982 = vlog2.f32 %v418_v56 }
  0xb6   : > { %v981_v58 = vpop.eup %980 }
  0xb7   : > { %v545_v60 = vmul.f32 0.6931472, %v981_v58 }
  0xb9   : > { %v546_v62 = vadd.f32 %v545_v60, %v1521_v39 }
  0xbb   : > { %v547_v4 = vsub.f32 %v541_v11, %v546_v62 }
  0xbd   : > { %v548_v6 = vmul.f32 %v1472_v14, %v547_v4 }
  0xbf   : > { %549 = vadd.xlane.f32.xlu1 %v548_v6  ;;  %v983_v39 = vpop.eup %982 }
  0xc0   : > { %v422_v10 = vmul.f32 0.6931472, %v983_v39 }
  0xc2   : > { %v423_v18 = vadd.f32 %v422_v10, %v1537_v46 }
  0xc3   : > { %559 = vadd.xlane.f32.xlu1 %v1472_v14 }
  0xc4   : > { %v424_v33 = vsub.f32 %v420_v28, %v423_v18 }
  0xc6   : > { %v425_v35 = vmul.f32 %v1436_v5, %v424_v33 }
  0xc8   : > { %426 = vadd.xlane.f32.xlu0 %v425_v35 }
  0xcc   : > { %571 = vadd.xlane.f32.xlu0 %v570_v22 }
 0x105   : > { %v437_v0 = vpop.xlane.xlu0 %436 }
 0x106   : > { %v438_v46 = vrot.slane %v437_v0, 4 }
 0x108   : > { %v439_v26 = vadd.f32 %v438_v46, %v437_v0 }
 0x10a   : > { %v440_v31 = vrot.slane %v439_v26, 2 }
 0x10c   : > { %v441_v42 = vadd.f32 %v440_v31, %v439_v26 }
 0x10e   : > { %v442_v48 = vrot.slane %v441_v42, 1 }
 0x110   : > { %v443_v3 = vadd.f32 %v442_v48, %v441_v42 }
 0x14c   : > { %v550_v36 = vpop.xlane.xlu1 %549 }
 0x14d   : > { %v551_v40 = vrot.slane %v550_v36, 4 }
 0x14f   : > { %v552_v25 = vadd.f32 %v551_v40, %v550_v36 }
 0x150   : > { %v560_v23 = vpop.xlane.xlu1 %559 }
 0x151   : > { %v561_v14 = vrot.slane %v560_v23, 4  ;;  %v553_v29 = vrot.slane %v552_v25, 2 }
 0x153   : > { %v562_v5 = vadd.f32 %v561_v14, %v560_v23  ;;  %v554_v38 = vadd.f32 %v553_v29, %v552_v25 }
 0x155   : > { %v427_v13 = vpop.xlane.xlu0 %426  ;;  %v563_v32 = vrot.slane %v562_v5, 2  ;;  %v555_v16 = vrot.slane %v554_v38, 1 }
 0x156   : > { %v428_v34 = vrot.slane %v427_v13, 4 }
 0x157   : > { %v564_v1 = vadd.f32 %v563_v32, %v562_v5  ;;  %v556_v53 = vadd.f32 %v555_v16, %v554_v38 }
 0x158   : > { %v429_v37 = vadd.f32 %v428_v34, %v427_v13 }
 0x159   : > { %v572_v41 = vpop.xlane.xlu0 %571  ;;  %v565_v2 = vrot.slane %v564_v1, 1 }
 0x15a   : > { %v430_v43 = vrot.slane %v429_v37, 2  ;;  %v573_v44 = vrot.slane %v572_v41, 4 }
 0x15b   : > { %v566_v20 = vadd.f32 %v565_v2, %v564_v1 }
 0x15c   : > { %v574_v45 = vadd.f32 %v573_v44, %v572_v41  ;;  %v431_v47 = vadd.f32 %v430_v43, %v429_v37 }
 0x15e   : > { %v575_v49 = vrot.slane %v574_v45, 2  ;;  %v432_v50 = vrot.slane %v431_v47, 1 }
 0x160   : > { %v576_v51 = vadd.f32 %v575_v49, %v574_v45  ;;  %v433_v52 = vadd.f32 %v432_v50, %v431_v47 }
 0x162   : > { %837 = vpush %v433_v52  ;;  %v577_v54 = vrot.slane %v576_v51, 1 }
 0x163   : > { %839 = vpush %v443_v3 }
 0x164   : > { %841 = vpush %v556_v53  ;;  %v578_v55 = vadd.f32 %v577_v54, %v576_v51 }
 0x165   : > { %843 = vpush %v566_v20 }
 0x166   : > { %845 = vpush %v578_v55 }
 0x193   : > { %s838_s24 = spop %837 }
 0x194   : > { %s582_s8 = sadd.f32 %s838_s24, %s581_s15  ;;  %s840_s28 = spop %839 }
 0x195   : > { %s586_s6 = sadd.f32 %s840_s28, %s815_s9  ;;  %s842_s0 = spop %841 }
 0x196   : > { %584 = sst [smem:[#allocation2]] %s582_s8  ;;  %s844_s13 = spop %843 }
 0x197   : > { %588 = sst [smem:[#allocation2 + $0x1]] %s586_s6  ;;  %s846_s30 = spop %845 }
 0x198   : > { %s590_s12 = sadd.f32 %s842_s0, %s816_s10  ;;  %605 = sbr.rel (!%p601_p2) target bundleno = 488 (0x1e8), region = 52 }
 0x199   : > { %s594_s7 = sadd.f32 %s844_s13, %s817_s14  ;;  %s820_s11 = sld [smem:[#allocation2 + $0x1]] (%p601_p2) }
 0x19a   : > { %592 = sst [smem:[#allocation2 + $0x2]] %s590_s12  ;;  %s606_s15 = sld [smem:[#allocation2]] (%p601_p2) }
 0x19b   : > { %596 = sst [smem:[#allocation2 + $0x3]] %s594_s7  ;;  %s821_s9 = sld [smem:[#allocation2 + $0x2]] (%p601_p2) }
 0x19c   : > { %s598_s5 = sadd.f32 %s846_s30, %s818_s27  ;;  %s822_s23 = sld [smem:[#allocation2 + $0x3]] (%p601_p2) }
 0x19e   : > { %600 = sst [smem:[#allocation2 + $0x4]] %s598_s5 }
 0x19f   : > { %v611_v56 = vstv %s820_s11  ;;  %s823_s10 = sld [smem:[#allocation2 + $0x4]] }
 0x1a0   : > { %984 = vrcp.f32 %v611_v56  ;;  %s610_s14 = ssub.f32 0.0, %s606_s15 }
 0x1a1   : > { %s615_s24 = ssub.f32 0.0, %s821_s9 }
 0x1a2   : > { %s616_s25 = smax.f32 %s1201_s29, %s822_s23  ;;  %p624_p7 = scmp.gt.f32.partialorder %s822_s23, 0.0 }
 0x1a3   : > { %v617_v7 = vstv %s616_s25 }
 0x1a4   : > { %986 = vrcp.f32 %v617_v7 }
 0x1a5   : > { %s622_s18 = smul.f32 0.0001953125, %s823_s10 }
 0x1aa   : > { %v985_v57 = vpop.eup %984 }
 0x1ab   : > { %847 = vpush %v985_v57 }
 0x1ae   : > { %v987_v24 = vpop.eup %986 }
 0x1af   : > { %849 = vpush %v987_v24 }
 0x1dc   : > { %s848_s27 = spop %847 }
 0x1dd   : > { %s614_s8 = smul.f32 %s848_s27, %s610_s14 }
 0x1df   : > { %v626_v58 = vstv %s614_s8 }
 0x1e0   : > { %s850_s28 = spop %849  ;;  %628 = vst.msk [vmem:[#allocation9] sm:$0x1] %vm627_vm15, %v626_v58 }
 0x1e1   : > { %s620_s6 = smul.f32 %s850_s28, %s615_s24 }
 0x1e3   : > { %s623_s0 = sadd.f32 %s622_s18, %s620_s6 }
 0x1e5   : > { %s1764_s0 = smov (!%p624_p7, %s623_s0), 0.0 }
 0x1e6   : > { %v629_v59 = vstv %s1764_s0 }
 0x1e7   : > { %630 = vst.msk [vmem:[#allocation10] sm:$0x1] %vm627_vm15, %v629_v59 }
 0x1e8 PF: > { %p881_p10 = scmp.eq.s32.totalorder %s1258_s21, 1  ;;  %s1202_s13 = smov [#allocation9]  }
 0x1e9   : > { %s638_s12 = sshll.u32 %s1202_s13, 4  ;;  %s1203_s7 = smov [#allocation10]   ;;  %s639_s12 = int_to_ptr.vmem [resolvable:$true] %s638_s12 }
 0x1ea   : > { %s649_s30 = sshll.u32 %s1203_s7, 4  ;;  %s1078_s5 = scalar_lea.vmem %s639_s12, 16  ;;  %s1665_s30 = int_to_ptr.vmem [resolvable:$true] %s649_s30 }
 0x1eb   : > { %p1079_p3 = scmp.ne.s32.totalorder %s639_s12, %s1078_s5  ;;  %s1084_s11 = scalar_lea.vmem %s639_s12, 32 }
 0x1ec   : > { %p1085_p8 = scmp.lt.s32.totalorder %s639_s12, %s639_s12  ;;  %p1086_p0 = scmp.lt.s32.totalorder %s1084_s11, %s1078_s5 }
 0x1ed   : > { %p1080_p4 = pnand %p1079_p3, %p881_p10 }
 0x1ee   : > { %p1087_p5 = por %p1086_p0, %p1085_p8 }
 0x1ef   : > { %p1081_p6 = pneg %p1080_p4 }
 0x1f1   : > { %p1088_p1 = pnand %p1087_p5, %p1081_p6 }
 0x1f3   : > { %1091 = shalt.err (!%p1088_p1)
}
 0x1f4   : > { %s1092_s25 = scalar_lea.hbm %s1738_s3, 16 }
 0x1f5   : > { %p1093_p13 = scmp.ne.s32.totalorder %s1738_s3, %s1092_s25  ;;  %p1098_p9 = scmp.lt.u32.totalorder %s1092_s25, %s1738_s3 }
 0x1f7   : > { %p1094_p11 = pnand %p1093_p13, %p881_p10 }
 0x1f9   : > { %p1095_p12 = pneg %p1094_p11 }
 0x1fb   : > { %p1100_p2 = pnand %p1098_p9, %p1095_p12 }
 0x1fd   : > { %1103 = shalt.err (!%p1100_p2)
}
 0x1fe   : > { %863 = dma.vmem_to_hbm [thread:$0]  (%p881_p10), %s639_s12, 16, %s1738_s3, [#allocation5]  }
 0x1ff   : > { %s1104_s18 = scalar_lea.vmem %s1665_s30, 16  ;;  %s1110_s8 = scalar_lea.vmem %s1665_s30, 32 }
 0x200   : > { %p1105_p7 = scmp.ne.s32.totalorder %s1665_s30, %s1104_s18  ;;  %p1111_p6 = scmp.lt.s32.totalorder %s1665_s30, %s1665_s30 }
 0x201   : > { %p1112_p8 = scmp.lt.s32.totalorder %s1110_s8, %s1104_s18 }
 0x202   : > { %p1106_p3 = pnand %p1105_p7, %p881_p10 }
 0x203   : > { %p1113_p0 = por %p1112_p8, %p1111_p6 }
 0x204   : > { %p1107_p4 = pneg %p1106_p3 }
 0x206   : > { %p1114_p5 = pnand %p1113_p0, %p1107_p4 }
 0x208   : > { %1117 = shalt.err (!%p1114_p5)
}
 0x209   : > { %s1118_s0 = scalar_lea.hbm %s1739_s4, 16 }
 0x20a   : > { %p1119_p1 = scmp.ne.s32.totalorder %s1739_s4, %s1118_s0  ;;  %p1124_p12 = scmp.lt.u32.totalorder %s1118_s0, %s1739_s4 }
 0x20c   : > { %p1120_p13 = pnand %p1119_p1, %p881_p10 }
 0x20e   : > { %p1121_p11 = pneg %p1120_p13 }
 0x210   : > { %p1126_p9 = pnand %p1124_p12, %p1121_p11 }
 0x212   : > { %1129 = shalt.err (!%p1126_p9)
}
 0x213   : > { %865 = dma.vmem_to_hbm [thread:$0]  (%p881_p10), %s1665_s30, 16, %s1739_s4, [#allocation11]  }
 0x214   : > { %1163 = dma.done.wait (%p881_p10), [#allocation5], 16  }
 0x215   : > { %1165 = vsyncadd (%p881_p10), [#allocation5], 4294967280 }
 0x216   : > { %1167 = dma.done.wait (%p881_p10), [#allocation11], 16  }
 0x217   : > { %1169 = vsyncadd (%p881_p10), [#allocation11], 4294967280 }
 0x218 PF: > { %s23_s20 = sadd.s32 1, %s1192_s20   ;;  %s1756_s15 = smov %s1176_s16 }
 0x219   : > { %p20_p2 = scmp.ge.s32.totalorder %s23_s20, 4   ;;  %s1757_s16 = smov %s1180_s17 }
 0x21a   : > { %s1758_s17 = smov %s1277_s26  ;;  %s1759_s18 = smov %s1188_s19 }
 0x21b   : > { %s1760_s19 = smov %s1762_s22  ;;  %22 = sbr.rel (!%p20_p2) target bundleno = 10 (0xa), region = 137 }
 0x222   :  { %666 = vsyncpa [#allocation4], 1 }
 0x223   :  { %668 = vsyncpa [#allocation4 + $0x1], 1 }
 0x224   :  { %669 = vsyncpa [#allocation7], 1 }
 0x225   :  { %671 = vsyncpa [#allocation7 + $0x1], 1 }
 0x226   :  { %672 = vsyncpa [#allocation5], 1 }
 0x227   :  { %674 = vsyncpa [#allocation5 + $0x1], 1 }
 0x228   :  { %675 = vsyncpa [#allocation11], 1 }

</bundles_post_ra>
